<compile_context>
chip_gen: v7x
topology: tpu7x:2x2x1
jax: 0.10.0
libtpu: 0.0.40
codegen_flags: <defaults>
</compile_context>

<pallas_src>
import jax
import jax.numpy as jnp
from jax.experimental import pallas as pl
from jax.experimental.pallas import tpu as pltpu

NUM_CLASS = 10     # stands in for c.num_class in the reference module
HIDDEN = 1024
LANE = 128
SUBLANE_BF16 = 16


def _round_up(n, m):
    return ((n + m - 1) // m) * m


def mlp_kernel(x_ref, w1_ref, b1_ref, w2_ref, b2_ref, o_ref):
    # Fused fc1 -> ReLU -> fc2 for one batch tile.
    # MXU inputs in bf16, accumulation in f32; bias add / ReLU in f32 on VPU.
    h = jnp.dot(x_ref[...], w1_ref[...],
                preferred_element_type=jnp.float32)       # [tb, H]  f32
    h = jnp.maximum(h + b1_ref[...], 0.0)                 # bias + ReLU (f32)
    y = jnp.dot(h.astype(jnp.bfloat16), w2_ref[...],
                preferred_element_type=jnp.float32)       # [tb, Cp] f32
    o_ref[...] = (y + b2_ref[...]).astype(o_ref.dtype)


def _weight_bytes(Fp, H, Cp):
    return Fp * H * 2 + H * 4 + H * Cp * 2 + Cp * 4


def _vmem_bytes(tb, Fp, H, Cp):
    # x / out tiles are double-buffered by the pipeline; the grid-invariant
    # weights are single-buffered (pl.Buffered(1)); the [tb, H] f32 hidden
    # activation + its bf16 copy live as compiler-internal VMEM scratch.
    return (2 * tb * Fp * 2          # x tile      (bf16, 2 buffers)
            + _weight_bytes(Fp, H, Cp)  # w1/b1/w2/b2 (1 buffer each)
            + 2 * tb * Cp * 4        # out tile    (f32, 2 buffers)
            + tb * H * 6)            # h f32 + h bf16 intermediates


def _vmem_capacity_bytes():
    try:
        info = pltpu.get_tpu_info()
        cap = getattr(info, "vmem_capacity_bytes", None)
        if cap:
            return int(cap)
    except Exception:
        pass
    return 64 << 20  # conservative default (v7x per-TensorCore VMEM)


def prepare_params(w1, b1, w2, b2):
    """Pad to lane multiples and cast to MXU dtypes ONCE (not per forward)."""
    F, H = w1.shape
    H2, C = w2.shape
    assert H2 == H and H % LANE == 0
    Fp = _round_up(F, LANE)
    Cp = _round_up(C, LANE)
    w1p = jnp.pad(w1, ((0, Fp - F), (0, 0))).astype(jnp.bfloat16)
    w2p = jnp.pad(w2, ((0, 0), (0, Cp - C))).astype(jnp.bfloat16)
    b1p = b1.reshape(1, H).astype(jnp.float32)
    b2p = jnp.pad(b2.reshape(1, C), ((0, 0), (0, Cp - C))).astype(jnp.float32)
    return {"w1p": w1p, "b1p": b1p, "w2p": w2p, "b2p": b2p,
            "F": F, "C": C, "H": H, "Fp": Fp, "Cp": Cp}


def clf_model_forward(x, params, *, batch_tile=None):
    """y = relu(x @ w1 + b1) @ w2 + b2, fused into a single Pallas kernel."""
    w1p, b1p = params["w1p"], params["b1p"]
    w2p, b2p = params["w2p"], params["b2p"]
    F, C, H = params["F"], params["C"], params["H"]
    Fp, Cp = params["Fp"], params["Cp"]
    B, Fx = x.shape
    assert Fx == F

    vmem_phys = _vmem_capacity_bytes()
    vmem_budget = int(0.72 * vmem_phys)
    if batch_tile is None:
        # Larger default tiles on 128 MiB-VMEM chips (v5e/v6e); v7x stays smaller.
        batch_tile = 1024 if vmem_phys >= (96 << 20) else 512

    if B <= 64:
        # Tiny-batch path: 16-row (bf16 sublane) tile instead of a 128-row pad.
        tb = _round_up(max(B, 1), SUBLANE_BF16)
    else:
        tb = max(LANE, (batch_tile // LANE) * LANE)
        bp_cover = _round_up(B, LANE)
        tb = min(tb, bp_cover)
        # Keep >= 2 grid steps when possible so the "parallel" batch axis can
        # shard across v7x's two TensorCores (no-op on single-TC chips).
        if bp_cover >= 2 * LANE:
            tb = min(tb, max(LANE, (bp_cover // (2 * LANE)) * LANE))
        while tb > LANE and _vmem_bytes(tb, Fp, H, Cp) > vmem_budget:
            tb = max(LANE, tb // 2)
    # TODO(synk): for very large input_size (Fp*H bf16 >> VMEM budget) add a K
    # grid axis over Fp with an f32 accumulator (pl.when init/finalize) instead
    # of loading all of w1 per tile.

    Bp = _round_up(B, tb)
    grid = (Bp // tb,)

    xp = x
    if (Bp, Fp) != (B, F) or x.dtype != jnp.bfloat16:
        xp = jnp.pad(x, ((0, Bp - B), (0, Fp - F))).astype(jnp.bfloat16)

    needed = _vmem_bytes(tb, Fp, H, Cp)
    # Headroom covers the fallback path where weights end up double-buffered.
    vmem_limit = int(min(
        max(needed + _weight_bytes(Fp, H, Cp) + (8 << 20), 32 << 20),
        vmem_phys - (8 << 20)))

    flops = 2 * Bp * Fp * H + 2 * Bp * H * Cp
    bytes_accessed = Bp * Fp * 2 + _weight_bytes(Fp, H, Cp) + Bp * Cp * 4

    def build(single_buffer_weights):
        wmode = ({"pipeline_mode": pl.Buffered(1)}
                 if single_buffer_weights else {})
        return pl.pallas_call(
            mlp_kernel,
            out_shape=jax.ShapeDtypeStruct((Bp, Cp), jnp.float32),
            grid_spec=pltpu.PrefetchScalarGridSpec(
                num_scalar_prefetch=0,
                grid=grid,
                in_specs=[
                    # batch-tiled activations (double-buffered)
                    pl.BlockSpec((tb, Fp), lambda i: (i, 0)),
                    # grid-invariant weights / biases (same block every step)
                    pl.BlockSpec((Fp, H), lambda i: (0, 0), **wmode),
                    pl.BlockSpec((1, H), lambda i: (0, 0), **wmode),
                    pl.BlockSpec((H, Cp), lambda i: (0, 0), **wmode),
                    pl.BlockSpec((1, Cp), lambda i: (0, 0), **wmode),
                ],
                out_specs=pl.BlockSpec((tb, Cp), lambda i: (i, 0)),
            ),
            compiler_params=pltpu.CompilerParams(
                dimension_semantics=("parallel",),
                vmem_limit_bytes=vmem_limit,
            ),
            cost_estimate=pl.CostEstimate(
                flops=int(flops), transcendentals=0,
                bytes_accessed=int(bytes_accessed)),
        )

    try:
        out = build(True)(xp, w1p, b1p, w2p, b2p)
    except Exception:
        # pipeline_mode support varies across jax versions; fall back to the
        # default (double-buffered) weight blocks rather than failing.
        out = build(False)(xp, w1p, b1p, w2p, b2p)

    return out[:B, :C]


def init_params(key, input_size, hidden, num_class):
    # Deterministic init mimicking nn.Linear's uniform(-1/sqrt(fan_in), +).
    k1, k2, k3, k4 = jax.random.split(key, 4)
    lim1 = 1.0 / jnp.sqrt(jnp.float32(input_size))
    lim2 = 1.0 / jnp.sqrt(jnp.float32(hidden))
    w1 = jax.random.uniform(k1, (input_size, hidden), jnp.float32, -lim1, lim1)
    b1 = jax.random.uniform(k2, (1, hidden), jnp.float32, -lim1, lim1)
    w2 = jax.random.uniform(k3, (hidden, num_class), jnp.float32, -lim2, lim2)
    b2 = jax.random.uniform(k4, (1, num_class), jnp.float32, -lim2, lim2)
    return w1, b1, w2, b2


if __name__ == "__main__":
    key = jax.random.PRNGKey(0)
    k_x, k_p = jax.random.split(key)

    batch, input_size = 8, 32
    x = jax.random.normal(k_x, (batch, input_size), jnp.float32)
    w1, b1, w2, b2 = init_params(k_p, input_size, HIDDEN, NUM_CLASS)

    # Pad/cast weights once (persistent bf16 params), then run the kernel.
    params = jax.tree_util.tree_map(jax.block_until_ready,
                                    prepare_params(w1, b1, w2, b2))
    out = clf_model_forward(x, params)
    out = jax.block_until_ready(out)

    # Reference in plain f32 JAX (same math as the PyTorch module).
    # Tolerance loosened because the kernel uses bf16 MXU inputs (f32 accum).
    ref = jnp.maximum(x @ w1 + b1, 0.0) @ w2 + b2
    assert out.shape == (batch, NUM_CLASS)
    assert jnp.allclose(out, ref, atol=2e-2, rtol=2e-2), (
        float(jnp.max(jnp.abs(out - ref))))

    print("KERNEL_OK")
</pallas_src>

<mosaic_0001>
module attributes {stable_mosaic.version = 11 : i64} {
  func.func @mlp_kernel(%arg0: i32, %arg1: memref<16x128xbf16, #tpu.memory_space<vmem>>, %arg2: memref<128x1024xbf16, #tpu.memory_space<vmem>>, %arg3: memref<1x1024xf32, #tpu.memory_space<vmem>>, %arg4: memref<1024x128xbf16, #tpu.memory_space<vmem>>, %arg5: memref<1x128xf32, #tpu.memory_space<vmem>>, %arg6: memref<16x128xf32, #tpu.memory_space<vmem>>) attributes {dimension_semantics = [#tpu.dimension_semantics<parallel>], iteration_bounds = array<i64: 1>, scalar_prefetch = 0 : i64, scratch_operands = 0 : i64, tpu.core_type = #tpu.core_type<tc>, window_params = [{transform_indices = @transform_0, window_bounds = array<i64: 16, 128>}, {pipeline_mode = #tpu.pipeline_mode<synchronous>, transform_indices = @transform_1, window_bounds = array<i64: 128, 1024>}, {pipeline_mode = #tpu.pipeline_mode<synchronous>, transform_indices = @transform_2, window_bounds = array<i64: 1, 1024>}, {pipeline_mode = #tpu.pipeline_mode<synchronous>, transform_indices = @transform_3, window_bounds = array<i64: 1024, 128>}, {pipeline_mode = #tpu.pipeline_mode<synchronous>, transform_indices = @transform_4, window_bounds = array<i64: 1, 128>}, {transform_indices = @transform_5, window_bounds = array<i64: 16, 128>}]} {
    %c0 = arith.constant 0 : index
    %c0_0 = arith.constant 0 : index
    %0 = vector.load %arg1[%c0, %c0_0] : memref<16x128xbf16, #tpu.memory_space<vmem>>, vector<16x128xbf16>
    %c0_1 = arith.constant 0 : index
    %c0_2 = arith.constant 0 : index
    %1 = vector.load %arg2[%c0_1, %c0_2] : memref<128x1024xbf16, #tpu.memory_space<vmem>>, vector<128x1024xbf16>
    %cst = arith.constant dense<0.000000e+00> : vector<16x1024xf32>
    %2 = tpu.matmul %0, %1, %cst {dimension_numbers = #tpu.dot_dimension_numbers<[1], [0], [0], [1], [0, 0, 1, 1], [], []>} : vector<16x128xbf16>, vector<128x1024xbf16>, vector<16x1024xf32> -> vector<16x1024xf32>
    %c0_3 = arith.constant 0 : index
    %c0_4 = arith.constant 0 : index
    %3 = vector.load %arg3[%c0_3, %c0_4] : memref<1x1024xf32, #tpu.memory_space<vmem>>, vector<1x1024xf32>
    %4 = vector.broadcast %3 : vector<1x1024xf32> to vector<16x1024xf32>
    %5 = arith.addf %2, %4 : vector<16x1024xf32>
    %cst_5 = arith.constant 0.000000e+00 : f32
    %6 = vector.broadcast %cst_5 : f32 to vector<16x1024xf32>
    %7 = arith.maximumf %5, %6 : vector<16x1024xf32>
    %8 = arith.truncf %7 : vector<16x1024xf32> to vector<16x1024xbf16>
    %c0_6 = arith.constant 0 : index
    %c0_7 = arith.constant 0 : index
    %9 = vector.load %arg4[%c0_6, %c0_7] : memref<1024x128xbf16, #tpu.memory_space<vmem>>, vector<1024x128xbf16>
    %cst_8 = arith.constant dense<0.000000e+00> : vector<16x128xf32>
    %10 = tpu.matmul %8, %9, %cst_8 {dimension_numbers = #tpu.dot_dimension_numbers<[1], [0], [0], [1], [0, 0, 1, 1], [], []>} : vector<16x1024xbf16>, vector<1024x128xbf16>, vector<16x128xf32> -> vector<16x128xf32>
    %c0_9 = arith.constant 0 : index
    %c0_10 = arith.constant 0 : index
    %11 = vector.load %arg5[%c0_9, %c0_10] : memref<1x128xf32, #tpu.memory_space<vmem>>, vector<1x128xf32>
    %12 = vector.broadcast %11 : vector<1x128xf32> to vector<16x128xf32>
    %13 = arith.addf %10, %12 : vector<16x128xf32>
    %c0_11 = arith.constant 0 : index
    %c0_12 = arith.constant 0 : index
    %14 = vector.load %arg6[%c0_11, %c0_12] : memref<16x128xf32, #tpu.memory_space<vmem>>, vector<16x128xf32>
    tpu.vector_store %arg6[%c0_11, %c0_12], %13 {strides = array<i32>} : memref<16x128xf32, #tpu.memory_space<vmem>>, vector<16x128xf32>,
    return
  }
  func.func @transform_0(%arg0: i32) -> (i32, i32) {
    %c0_i32 = arith.constant 0 : i32
    %c0_i32_0 = arith.constant 0 : i32
    return %arg0, %c0_i32 : i32, i32
  }
  func.func @transform_1(%arg0: i32) -> (i32, i32) {
    %c0_i32 = arith.constant 0 : i32
    %c0_i32_0 = arith.constant 0 : i32
    %c0_i32_1 = arith.constant 0 : i32
    return %c0_i32, %c0_i32_0 : i32, i32
  }
  func.func @transform_2(%arg0: i32) -> (i32, i32) {
    %c0_i32 = arith.constant 0 : i32
    %c0_i32_0 = arith.constant 0 : i32
    %c0_i32_1 = arith.constant 0 : i32
    return %c0_i32, %c0_i32_0 : i32, i32
  }
  func.func @transform_3(%arg0: i32) -> (i32, i32) {
    %c0_i32 = arith.constant 0 : i32
    %c0_i32_0 = arith.constant 0 : i32
    %c0_i32_1 = arith.constant 0 : i32
    return %c0_i32, %c0_i32_0 : i32, i32
  }
  func.func @transform_4(%arg0: i32) -> (i32, i32) {
    %c0_i32 = arith.constant 0 : i32
    %c0_i32_0 = arith.constant 0 : i32
    %c0_i32_1 = arith.constant 0 : i32
    return %c0_i32, %c0_i32_0 : i32, i32
  }
  func.func @transform_5(%arg0: i32) -> (i32, i32) {
    %c0_i32 = arith.constant 0 : i32
    %c0_i32_0 = arith.constant 0 : i32
    return %arg0, %c0_i32 : i32, i32
  }
}

module attributes {stable_mosaic.version = 11 : i64} {
  func.func @mlp_kernel(%arg0: i32, %arg1: memref<16x128xbf16, #tpu.memory_space<vmem>>, %arg2: memref<128x1024xbf16, #tpu.memory_space<vmem>>, %arg3: memref<1x1024xf32, #tpu.memory_space<vmem>>, %arg4: memref<1024x128xbf16, #tpu.memory_space<vmem>>, %arg5: memref<1x128xf32, #tpu.memory_space<vmem>>, %arg6: memref<16x128xf32, #tpu.memory_space<vmem>>) attributes {dimension_semantics = [#tpu.dimension_semantics<parallel>], iteration_bounds = array<i64: 1>, scalar_prefetch = 0 : i64, scratch_operands = 0 : i64, tpu.core_type = #tpu.core_type<tc>, window_params = [{transform_indices = @transform_0, window_bounds = array<i64: 16, 128>}, {pipeline_mode = #tpu.pipeline_mode<synchronous>, transform_indices = @transform_1, window_bounds = array<i64: 128, 1024>}, {pipeline_mode = #tpu.pipeline_mode<synchronous>, transform_indices = @transform_2, window_bounds = array<i64: 1, 1024>}, {pipeline_mode = #tpu.pipeline_mode<synchronous>, transform_indices = @transform_3, window_bounds = array<i64: 1024, 128>}, {pipeline_mode = #tpu.pipeline_mode<synchronous>, transform_indices = @transform_4, window_bounds = array<i64: 1, 128>}, {transform_indices = @transform_5, window_bounds = array<i64: 16, 128>}]} {
    %c0 = arith.constant 0 : index
    %c0_0 = arith.constant 0 : index
    %0 = vector.load %arg1[%c0, %c0_0] : memref<16x128xbf16, #tpu.memory_space<vmem>>, vector<16x128xbf16>
    %c0_1 = arith.constant 0 : index
    %c0_2 = arith.constant 0 : index
    %1 = vector.load %arg2[%c0_1, %c0_2] : memref<128x1024xbf16, #tpu.memory_space<vmem>>, vector<128x1024xbf16>
    %cst = arith.constant dense<0.000000e+00> : vector<16x1024xf32>
    %2 = tpu.matmul %0, %1, %cst {dimension_numbers = #tpu.dot_dimension_numbers<[1], [0], [0], [1], [0, 0, 1, 1], [], []>} : vector<16x128xbf16>, vector<128x1024xbf16>, vector<16x1024xf32> -> vector<16x1024xf32>
    %c0_3 = arith.constant 0 : index
    %c0_4 = arith.constant 0 : index
    %3 = vector.load %arg3[%c0_3, %c0_4] : memref<1x1024xf32, #tpu.memory_space<vmem>>, vector<1x1024xf32>
    %4 = vector.broadcast %3 : vector<1x1024xf32> to vector<16x1024xf32>
    %5 = arith.addf %2, %4 : vector<16x1024xf32>
    %cst_5 = arith.constant 0.000000e+00 : f32
    %6 = vector.broadcast %cst_5 : f32 to vector<16x1024xf32>
    %7 = arith.maximumf %5, %6 : vector<16x1024xf32>
    %8 = arith.truncf %7 : vector<16x1024xf32> to vector<16x1024xbf16>
    %c0_6 = arith.constant 0 : index
    %c0_7 = arith.constant 0 : index
    %9 = vector.load %arg4[%c0_6, %c0_7] : memref<1024x128xbf16, #tpu.memory_space<vmem>>, vector<1024x128xbf16>
    %cst_8 = arith.constant dense<0.000000e+00> : vector<16x128xf32>
    %10 = tpu.matmul %8, %9, %cst_8 {dimension_numbers = #tpu.dot_dimension_numbers<[1], [0], [0], [1], [0, 0, 1, 1], [], []>} : vector<16x1024xbf16>, vector<1024x128xbf16>, vector<16x128xf32> -> vector<16x128xf32>
    %c0_9 = arith.constant 0 : index
    %c0_10 = arith.constant 0 : index
    %11 = vector.load %arg5[%c0_9, %c0_10] : memref<1x128xf32, #tpu.memory_space<vmem>>, vector<1x128xf32>
    %12 = vector.broadcast %11 : vector<1x128xf32> to vector<16x128xf32>
    %13 = arith.addf %10, %12 : vector<16x128xf32>
    %c0_11 = arith.constant 0 : index
    %c0_12 = arith.constant 0 : index
    %14 = vector.load %arg6[%c0_11, %c0_12] : memref<16x128xf32, #tpu.memory_space<vmem>>, vector<16x128xf32>
    tpu.vector_store %arg6[%c0_11, %c0_12], %13 {strides = array<i32>} : memref<16x128xf32, #tpu.memory_space<vmem>>, vector<16x128xf32>,
    return
  }
  func.func @transform_0(%arg0: i32) -> (i32, i32) {
    %c0_i32 = arith.constant 0 : i32
    %c0_i32_0 = arith.constant 0 : i32
    return %arg0, %c0_i32 : i32, i32
  }
  func.func @transform_1(%arg0: i32) -> (i32, i32) {
    %c0_i32 = arith.constant 0 : i32
    %c0_i32_0 = arith.constant 0 : i32
    %c0_i32_1 = arith.constant 0 : i32
    return %c0_i32, %c0_i32_0 : i32, i32
  }
  func.func @transform_2(%arg0: i32) -> (i32, i32) {
    %c0_i32 = arith.constant 0 : i32
    %c0_i32_0 = arith.constant 0 : i32
    %c0_i32_1 = arith.constant 0 : i32
    return %c0_i32, %c0_i32_0 : i32, i32
  }
  func.func @transform_3(%arg0: i32) -> (i32, i32) {
    %c0_i32 = arith.constant 0 : i32
    %c0_i32_0 = arith.constant 0 : i32
    %c0_i32_1 = arith.constant 0 : i32
    return %c0_i32, %c0_i32_0 : i32, i32
  }
  func.func @transform_4(%arg0: i32) -> (i32, i32) {
    %c0_i32 = arith.constant 0 : i32
    %c0_i32_0 = arith.constant 0 : i32
    %c0_i32_1 = arith.constant 0 : i32
    return %c0_i32, %c0_i32_0 : i32, i32
  }
  func.func @transform_5(%arg0: i32) -> (i32, i32) {
    %c0_i32 = arith.constant 0 : i32
    %c0_i32_0 = arith.constant 0 : i32
    return %arg0, %c0_i32 : i32, i32
  }
}

</mosaic_0001>

<bundles_post_ra>
// kernel: tpu_custom_call.1
= control target key start
LH: loop header
LB: loop body
LE: loop exit
PB: predicated region body
PF: predicated region fallthrough
CT: control target
= control target key end

     0   :  { %10 = vsyncpa [#allocation3], 0  ;;  %s1970_s0 = inlined_call_operand.hbm [shape: bf16[16,128], index: 0, kind: input, shape index: {}]   ;;  %s1971_s1 = inlined_call_operand.hbm [shape: bf16[128,1024], index: 1, kind: input, shape index: {}]   ;;  %s1972_s2 = inlined_call_operand.hbm [shape: f32[1,1024], index: 2, kind: input, shape index: {}]   ;;  %s1973_s3 = inlined_call_operand.hbm [shape: bf16[1024,128], index: 3, kind: input, shape index: {}]   ;;  %s1974_s4 = inlined_call_operand.vmem [shape: f32[1,128], index: 4, kind: input, shape index: {}]   ;;  %s1975_s5 = inlined_call_operand.hbm [shape: f32[16,128], index: 5, kind: output, shape index: {}]  }
   0x1   :  { %11 = vsyncpa [#allocation6], 0 }
   0x2   :  { %12 = vsyncpa [#allocation9], 0 }
   0x3   :  { %13 = vsyncpa [#allocation4], 0  ;;  %s1822_s18 = smov [#allocation5]   ;;  %s1704_s22 = scalar_lea.hbm %s1971_s1, 8192 }
   0x4   :  { %s31_s19 = sshll.u32 %s1822_s18, 4  ;;  %p1705_p0 = scmp.ne.s32.totalorder %s1971_s1, %s1704_s22  ;;  %s32_s19 = int_to_ptr.vmem [resolvable:$true] %s31_s19 }
   0x5   :  { %p1708_p1 = scmp.lt.u32.totalorder %s1704_s22, %s1971_s1 }
   0x7   :  { %p1710_p2 = pnand %p1708_p1, %p1705_p0 }
   0x9   :  { %1713 = shalt.err (!%p1710_p2)
}
   0xa   :  { %s1714_s27 = scalar_lea.vmem %s32_s19, 8192  ;;  %p1719_p4 = scmp.lt.s32.totalorder %s32_s19, %s32_s19 }
   0xb   :  { %p1715_p3 = scmp.ne.s32.totalorder %s32_s19, %s1714_s27  ;;  %p1720_p5 = scmp.lt.s32.totalorder %s1714_s27, %s1714_s27 }
   0xd   :  { %p1721_p6 = por %p1720_p5, %p1719_p4 }
   0xf   :  { %p1722_p7 = pnand %p1721_p6, %p1715_p3 }
  0x11   :  { %1725 = shalt.err (!%p1722_p7)
}
  0x12   :  { %s1823_s28 = smov 512   ;;  %s1824_s29 = smov 32  }
  0x13   :  { %37 = dma.hbm_to_vmem [thread:$0]  %s1971_s1, 8192, %s32_s19, [#allocation6], %s1823_s28, %s1823_s28, %s1824_s29  }
  0x14   :  { %s1825_s7 = smov [#allocation2]   ;;  %s1726_s11 = scalar_lea.hbm %s1970_s0, 128 }
  0x15   :  { %s19_s8 = sshll.u32 %s1825_s7, 4  ;;  %p1727_p8 = scmp.ne.s32.totalorder %s1970_s0, %s1726_s11  ;;  %s20_s8 = int_to_ptr.vmem [resolvable:$true] %s19_s8 }
  0x16   :  { %p1730_p9 = scmp.lt.u32.totalorder %s1726_s11, %s1970_s0 }
  0x18   :  { %p1732_p10 = pnand %p1730_p9, %p1727_p8 }
  0x1a   :  { %1735 = shalt.err (!%p1732_p10)
}
  0x1b   :  { %s1736_s16 = scalar_lea.vmem %s20_s8, 128  ;;  %p1741_p12 = scmp.lt.s32.totalorder %s20_s8, %s20_s8 }
  0x1c   :  { %p1737_p11 = scmp.ne.s32.totalorder %s20_s8, %s1736_s16  ;;  %p1742_p13 = scmp.lt.s32.totalorder %s1736_s16, %s1736_s16 }
  0x1e   :  { %p1743_p0 = por %p1742_p13, %p1741_p12 }
  0x20   :  { %p1744_p1 = pnand %p1743_p0, %p1737_p11 }
  0x22   :  { %1747 = shalt.err (!%p1744_p1)
}
  0x23   :  { %s1826_s1 = smov 64   ;;  %s1827_s17 = smov 4  }
  0x24   :  { %25 = dma.hbm_to_vmem [thread:$0]  %s1970_s0, 128, %s20_s8, [#allocation3], %s1826_s1, %s1826_s1, %s1827_s17  }
  0x25   :  { %s1828_s20 = smov [#allocation7]   ;;  %s1829_s22 = smov [#allocation8]  }
  0x26   :  { %s44_s21 = sshll.u32 %s1828_s20, 4  ;;  %s53_s23 = sshll.u32 %s1829_s22, 4  ;;  %s45_s21 = int_to_ptr.vmem [resolvable:$true] %s44_s21  ;;  %s1891_s23 = int_to_ptr.vmem [resolvable:$true] %s53_s23 }
  0x27   :  { %s1748_s26 = scalar_lea.hbm %s1972_s2, 128 }
  0x28   :  { %p1749_p2 = scmp.ne.s32.totalorder %s1972_s2, %s1748_s26  ;;  %p1752_p3 = scmp.lt.u32.totalorder %s1748_s26, %s1972_s2 }
  0x2a   :  { %p1754_p4 = pnand %p1752_p3, %p1749_p2 }
  0x2c   :  { %1757 = shalt.err (!%p1754_p4)
}
  0x2d   :  { %s1758_s0 = scalar_lea.vmem %s45_s21, 128  ;;  %p1763_p6 = scmp.lt.s32.totalorder %s45_s21, %s45_s21 }
  0x2e   :  { %p1759_p5 = scmp.ne.s32.totalorder %s45_s21, %s1758_s0  ;;  %p1764_p7 = scmp.lt.s32.totalorder %s1758_s0, %s1758_s0 }
  0x30   :  { %p1765_p8 = por %p1764_p7, %p1763_p6 }
  0x32   :  { %p1766_p9 = pnand %p1765_p8, %p1759_p5 }
  0x34   :  { %1769 = shalt.err (!%p1766_p9)
}
  0x35   :  { %47 = dma.hbm_to_vmem [thread:$0]  %s1972_s2, 128, %s45_s21, [#allocation6]  }
  0x36   :  { %s1770_s10 = scalar_lea.hbm %s1973_s3, 8192 }
  0x37   :  { %p1771_p10 = scmp.ne.s32.totalorder %s1973_s3, %s1770_s10  ;;  %p1774_p11 = scmp.lt.u32.totalorder %s1770_s10, %s1973_s3 }
  0x39   :  { %p1776_p12 = pnand %p1774_p11, %p1771_p10 }
  0x3b   :  { %1779 = shalt.err (!%p1776_p12)
}
  0x3c   :  { %s1780_s15 = scalar_lea.vmem %s1891_s23, 8192  ;;  %p1785_p0 = scmp.lt.s32.totalorder %s1891_s23, %s1891_s23 }
  0x3d   :  { %p1781_p13 = scmp.ne.s32.totalorder %s1891_s23, %s1780_s15  ;;  %p1786_p1 = scmp.lt.s32.totalorder %s1780_s15, %s1780_s15 }
  0x3f   :  { %p1787_p2 = por %p1786_p1, %p1785_p0 }
  0x41   :  { %p1788_p3 = pnand %p1787_p2, %p1781_p13 }
  0x43   :  { %1791 = shalt.err (!%p1788_p3)
}
  0x44   :  { %59 = dma.hbm_to_vmem [thread:$0]  %s1973_s3, 8192, %s1891_s23, [#allocation9], %s1826_s1, %s1826_s1, %s1827_s17  }
  0x45   :  { %1814 = dma.done.wait [#allocation3], 128  }
  0x46   :  { %1815 = vsyncadd [#allocation3], 4294967168 }
  0x47   :  { %1816 = dma.done.wait [#allocation6], 8320  }
  0x48   :  { %1817 = vsyncadd [#allocation6], 4294958976 }
  0x49   :  { %1818 = dma.done.wait [#allocation9], 8192  }
  0x4a   :  { %1819 = vsyncadd [#allocation9], 4294959104  ;;  %v1830_v0 = vmov 0   ;;  %v77_v1 = vld [vmem:[#allocation5] sm:$0xff]  ;;  %v78_v3 = vld [vmem:[#allocation5 + $0x8] sm:$0xff] }
  0x4b   :  { %541 = vmatprep.mubr.bf16.mxu0 %v1830_v0  ;;  %584 = vmatprep.mubr.bf16.mxu1 %v1830_v0  ;;  %v81_v2 = vld [vmem:[#allocation5 + $0x20] sm:$0xff]  ;;  %v82_v5 = vld [vmem:[#allocation5 + $0x28] sm:$0xff]  ;;  %v79_v60 = vld [vmem:[#allocation5 + $0x10] sm:$0xff] }
  0x4c   :  { %v1411_v4 = vcombine.high %v77_v1, %v81_v2  ;;  %v1410_v6 = vcombine.low %v77_v1, %v81_v2  ;;  %v85_v7 = vld [vmem:[#allocation5 + $0x40] sm:$0xff]  ;;  %v1413_v9 = vcombine.high %v78_v3, %v82_v5  ;;  %v1412_v10 = vcombine.low %v78_v3, %v82_v5  ;;  %v86_v12 = vld [vmem:[#allocation5 + $0x48] sm:$0xff]  ;;  %v83_v63 = vld [vmem:[#allocation5 + $0x30] sm:$0xff] }
  0x4d   :  { %v89_v8 = vld [vmem:[#allocation5 + $0x60] sm:$0xff]  ;;  %v90_v13 = vld [vmem:[#allocation5 + $0x68] sm:$0xff]  ;;  %v80_v2 = vld [vmem:[#allocation5 + $0x18] sm:$0xff] }
  0x4e   :  { %v1419_v11 = vcombine.high %v85_v7, %v89_v8  ;;  %v93_v14 = vld [vmem:[#allocation5 + $0x80] sm:$0xff]  ;;  %509 = vmatprep.subr.bf16.mxu0 %v1411_v4  ;;  %v1421_v15 = vcombine.high %v86_v12, %v90_v13  ;;  %v94_v17 = vld [vmem:[#allocation5 + $0x88] sm:$0xff]  ;;  %552 = vmatprep.subr.bf16.mxu1 %v1413_v9  ;;  %v1418_v19 = vcombine.low %v85_v7, %v89_v8  ;;  %v84_v3 = vld [vmem:[#allocation5 + $0x38] sm:$0xff] }
  0x4f   :  { %v97_v16 = vld [vmem:[#allocation5 + $0xa0] sm:$0xff]  ;;  %v98_v18 = vld [vmem:[#allocation5 + $0xa8] sm:$0xff]  ;;  %510 = vmatpush1.bf16.msra.mxu0 %v1410_v6  ;;  %553 = vmatpush1.bf16.msra.mxu1 %v1412_v10  ;;  %v1420_v20 = vcombine.low %v86_v12, %v90_v13  ;;  %v87_v5 = vld [vmem:[#allocation5 + $0x50] sm:$0xff]  ;;  %v1415_v8 = vcombine.high %v79_v60, %v83_v63  ;;  %v1417_v10 = vcombine.high %v80_v2, %v84_v3 }
  0x50   :  { %511 = vmatprep.subr.bf16.mxu0 %v1419_v11  ;;  %v1427_v21 = vcombine.high %v93_v14, %v97_v16  ;;  %554 = vmatprep.subr.bf16.mxu1 %v1421_v15  ;;  %v1429_v22 = vcombine.high %v94_v17, %v98_v18  ;;  %v101_v23 = vld [vmem:[#allocation5 + $0xc0] sm:$0xff]  ;;  %v102_v25 = vld [vmem:[#allocation5 + $0xc8] sm:$0xff]  ;;  %v1426_v27 = vcombine.low %v93_v14, %v97_v16  ;;  %v1927_v7 = vld [vmem:[#allocation2] sm:$0xff]  }
  0x51   :  { %v105_v24 = vld [vmem:[#allocation5 + $0xe0] sm:$0xff]  ;;  %v106_v26 = vld [vmem:[#allocation5 + $0xe8] sm:$0xff]  ;;  %v1428_v28 = vcombine.low %v94_v17, %v98_v18  ;;  %v91_v9 = vld [vmem:[#allocation5 + $0x70] sm:$0xff]  ;;  %v1414_v13 = vcombine.low %v79_v60, %v83_v63  ;;  %v1416_v15 = vcombine.low %v80_v2, %v84_v3 }
  0x52   :  { %v1435_v29 = vcombine.high %v101_v23, %v105_v24  ;;  %v1437_v30 = vcombine.high %v102_v25, %v106_v26  ;;  %v109_v31 = vld [vmem:[#allocation5 + $0x100] sm:$0xff]  ;;  %v110_v33 = vld [vmem:[#allocation5 + $0x108] sm:$0xff]  ;;  %v1434_v35 = vcombine.low %v101_v23, %v105_v24  ;;  %v1436_v36 = vcombine.low %v102_v25, %v106_v26  ;;  %v88_v11 = vld [vmem:[#allocation5 + $0x58] sm:$0xff] }
  0x53   :  { %512 = vmatpush1.bf16.msra.mxu0 %v1418_v19  ;;  %555 = vmatpush1.bf16.msra.mxu1 %v1420_v20  ;;  %v113_v32 = vld [vmem:[#allocation5 + $0x120] sm:$0xff]  ;;  %v114_v34 = vld [vmem:[#allocation5 + $0x128] sm:$0xff]  ;;  %v92_v12 = vld [vmem:[#allocation5 + $0x78] sm:$0xff]  ;;  %v1423_v16 = vcombine.high %v87_v5, %v91_v9 }
  0x54   :  { %513 = vmatprep.subr.bf16.mxu0 %v1427_v21  ;;  %556 = vmatprep.subr.bf16.mxu1 %v1429_v22  ;;  %v1443_v37 = vcombine.high %v109_v31, %v113_v32  ;;  %v1445_v38 = vcombine.high %v110_v33, %v114_v34  ;;  %v117_v39 = vld [vmem:[#allocation5 + $0x140] sm:$0xff]  ;;  %v118_v41 = vld [vmem:[#allocation5 + $0x148] sm:$0xff]  ;;  %v1442_v43 = vcombine.low %v109_v31, %v113_v32  ;;  %v95_v14 = vld [vmem:[#allocation5 + $0x90] sm:$0xff] }
  0x55   :  { %v121_v40 = vld [vmem:[#allocation5 + $0x160] sm:$0xff]  ;;  %v122_v42 = vld [vmem:[#allocation5 + $0x168] sm:$0xff]  ;;  %v1444_v44 = vcombine.low %v110_v33, %v114_v34  ;;  %v99_v17 = vld [vmem:[#allocation5 + $0xb0] sm:$0xff]  ;;  %v1425_v18 = vcombine.high %v88_v11, %v92_v12  ;;  %v1422_v21 = vcombine.low %v87_v5, %v91_v9  ;;  %v1424_v23 = vcombine.low %v88_v11, %v92_v12 }
  0x56   :  { %v1451_v45 = vcombine.high %v117_v39, %v121_v40  ;;  %v1453_v46 = vcombine.high %v118_v41, %v122_v42  ;;  %v125_v47 = vld [vmem:[#allocation5 + $0x180] sm:$0xff]  ;;  %v126_v49 = vld [vmem:[#allocation5 + $0x188] sm:$0xff]  ;;  %v1450_v51 = vcombine.low %v117_v39, %v121_v40  ;;  %v1452_v52 = vcombine.low %v118_v41, %v122_v42  ;;  %v96_v19 = vld [vmem:[#allocation5 + $0x98] sm:$0xff] }
  0x57   :  { %514 = vmatpush1.bf16.msra.mxu0 %v1426_v27  ;;  %557 = vmatpush1.bf16.msra.mxu1 %v1428_v28  ;;  %v129_v48 = vld [vmem:[#allocation5 + $0x1a0] sm:$0xff]  ;;  %v130_v50 = vld [vmem:[#allocation5 + $0x1a8] sm:$0xff]  ;;  %v100_v20 = vld [vmem:[#allocation5 + $0xb8] sm:$0xff]  ;;  %v1431_v24 = vcombine.high %v95_v14, %v99_v17 }
  0x58   :  { %515 = vmatprep.subr.bf16.mxu0 %v1435_v29  ;;  %558 = vmatprep.subr.bf16.mxu1 %v1437_v30  ;;  %v1459_v53 = vcombine.high %v125_v47, %v129_v48  ;;  %v133_v54 = vld [vmem:[#allocation5 + $0x1c0] sm:$0xff]  ;;  %v1461_v56 = vcombine.high %v126_v49, %v130_v50  ;;  %v134_v57 = vld [vmem:[#allocation5 + $0x1c8] sm:$0xff]  ;;  %v1458_v59 = vcombine.low %v125_v47, %v129_v48  ;;  %v103_v22 = vld [vmem:[#allocation5 + $0xd0] sm:$0xff] }
  0x59   :  { %v137_v55 = vld [vmem:[#allocation5 + $0x1e0] sm:$0xff]  ;;  %v138_v58 = vld [vmem:[#allocation5 + $0x1e8] sm:$0xff]  ;;  %v1460_v61 = vcombine.low %v126_v49, %v130_v50  ;;  %v107_v25 = vld [vmem:[#allocation5 + $0xf0] sm:$0xff]  ;;  %v1433_v26 = vcombine.high %v96_v19, %v100_v20  ;;  %v1430_v29 = vcombine.low %v95_v14, %v99_v17  ;;  %v1432_v31 = vcombine.low %v96_v19, %v100_v20 }
  0x5a   :  { %v1467_v62 = vcombine.high %v133_v54, %v137_v55  ;;  %v1469_v1 = vcombine.high %v134_v57, %v138_v58  ;;  %v1466_v4 = vcombine.low %v133_v54, %v137_v55  ;;  %v1468_v6 = vcombine.low %v134_v57, %v138_v58  ;;  %v104_v27 = vld [vmem:[#allocation5 + $0xd8] sm:$0xff]  ;;  %v111_v30 = vld [vmem:[#allocation5 + $0x110] sm:$0xff]  ;;  %v1641_v3 = vld [vmem:[#allocation8 + $0xc0] sm:$0xff]  }
  0x5b   :  { %516 = vmatpush1.bf16.msra.mxu0 %v1434_v35  ;;  %559 = vmatpush1.bf16.msra.mxu1 %v1436_v36  ;;  %v108_v28 = vld [vmem:[#allocation5 + $0xf8] sm:$0xff]  ;;  %v1439_v32 = vcombine.high %v103_v22, %v107_v25  ;;  %v115_v33 = vld [vmem:[#allocation5 + $0x130] sm:$0xff]  ;;  %v1642_v5 = vld [vmem:[#allocation8] sm:$0xff]  }
  0x5c   :  { %517 = vmatprep.subr.bf16.mxu0 %v1443_v37  ;;  %560 = vmatprep.subr.bf16.mxu1 %v1445_v38  ;;  %v1441_v34 = vcombine.high %v104_v27, %v108_v28  ;;  %v112_v35 = vld [vmem:[#allocation5 + $0x118] sm:$0xff]  ;;  %v1438_v37 = vcombine.low %v103_v22, %v107_v25  ;;  %v119_v38 = vld [vmem:[#allocation5 + $0x150] sm:$0xff]  ;;  %v1440_v40 = vcombine.low %v104_v27, %v108_v28  ;;  %v1653_v17 = vld [vmem:[#allocation8 + $0xd8] sm:$0xff]  }
  0x5d   :  { %v116_v36 = vld [vmem:[#allocation5 + $0x138] sm:$0xff]  ;;  %v123_v39 = vld [vmem:[#allocation5 + $0x170] sm:$0xff]  ;;  %v1655_v19 = vld [vmem:[#allocation8 + $0x98] sm:$0xff]  }
  0x5e   :  { %v120_v41 = vld [vmem:[#allocation5 + $0x158] sm:$0xff]  ;;  %v1448_v47 = vcombine.low %v112_v35, %v116_v36  ;;  %v1455_v48 = vcombine.high %v119_v38, %v123_v39  ;;  %v139_v54 = vld [vmem:[#allocation5 + $0x1f0] sm:$0xff]  ;;  %v1656_v20 = vld [vmem:[#allocation8 + $0x60] sm:$0xff]  }
  0x5f   :  { %518 = vmatpush1.bf16.msra.mxu0 %v1442_v43  ;;  %561 = vmatpush1.bf16.msra.mxu1 %v1444_v44  ;;  %v124_v42 = vld [vmem:[#allocation5 + $0x178] sm:$0xff]  ;;  %v1449_v43 = vcombine.high %v112_v35, %v116_v36  ;;  %v1446_v44 = vcombine.low %v111_v30, %v115_v33  ;;  %v1645_v9 = vld [vmem:[#allocation8 + $0xc8] sm:$0xff]   ;;  %v1659_v22 = vld [vmem:[#allocation8 + $0xa0] sm:$0xff]  }
  0x60   :  { %519 = vmatprep.subr.bf16.mxu0 %v1451_v45  ;;  %562 = vmatprep.subr.bf16.mxu1 %v1453_v46  ;;  %v127_v45 = vld [vmem:[#allocation5 + $0x190] sm:$0xff]  ;;  %v128_v49 = vld [vmem:[#allocation5 + $0x198] sm:$0xff]  ;;  %v1456_v55 = vcombine.low %v120_v41, %v124_v42  ;;  %v1672_v35 = vld [vmem:[#allocation8 + $0x140] sm:$0xff]  }
  0x61   :  { %v131_v46 = vld [vmem:[#allocation5 + $0x1b0] sm:$0xff]  ;;  %v132_v50 = vld [vmem:[#allocation5 + $0x1b8] sm:$0xff]  ;;  %v1673_v36 = vld [vmem:[#allocation8 + $0x1c0] sm:$0xff]  }
  0x62   :  { %v136_v57 = vld [vmem:[#allocation5 + $0x1d8] sm:$0xff]  ;;  %v1462_v60 = vcombine.low %v127_v45, %v131_v46  ;;  %v1647_v11 = vld [vmem:[#allocation8 + $0x88] sm:$0xff]  }
  0x63   :  { %520 = vmatpush1.bf16.msra.mxu0 %v1450_v51  ;;  %563 = vmatpush1.bf16.msra.mxu1 %v1452_v52  ;;  %v1457_v51 = vcombine.high %v120_v41, %v124_v42  ;;  %v1454_v52 = vcombine.low %v119_v38, %v123_v39  ;;  %v140_v58 = vld [vmem:[#allocation5 + $0x1f8] sm:$0xff]  ;;  %v1662_v25 = vld [vmem:[#allocation8 + $0x28] sm:$0xff]  }
  0x64   :  { %521 = vmatprep.subr.bf16.mxu0 %v1459_v53  ;;  %564 = vmatprep.subr.bf16.mxu1 %v1461_v56  ;;  %v135_v53 = vld [vmem:[#allocation5 + $0x1d0] sm:$0xff]  ;;  %v1463_v56 = vcombine.high %v127_v45, %v131_v46  ;;  %v1473_v63 = vcombine.high %v136_v57, %v140_v58  ;;  %v1648_v12 = vld [vmem:[#allocation8 + $0x50] sm:$0xff]  }
  0x65   :  { %v1470_v2 = vcombine.low %v135_v53, %v139_v54  ;;  %v1650_v14 = vld [vmem:[#allocation8 + $0x10] sm:$0xff]  }
  0x66   :  { %v1664_v27 = vld [vmem:[#allocation8 + $0x70] sm:$0xff]  }
  0x67   :  { %522 = vmatpush1.bf16.msra.mxu0 %v1458_v59  ;;  %565 = vmatpush1.bf16.msra.mxu1 %v1460_v61  ;;  %v1465_v59 = vcombine.high %v128_v49, %v132_v50  ;;  %v1464_v61 = vcombine.low %v128_v49, %v132_v50  ;;  %v1665_v28 = vld [vmem:[#allocation8 + $0xf0] sm:$0xff]  }
  0x68   :  { %523 = vmatprep.subr.bf16.mxu0 %v1467_v62  ;;  %566 = vmatprep.subr.bf16.mxu1 %v1469_v1  ;;  %v1471_v62 = vcombine.high %v135_v53, %v139_v54  ;;  %v1640_v1 = vld [vmem:[#allocation8 + $0x40] sm:$0xff]  }
  0x6b   :  { %524 = vmatpush1.bf16.msra.mxu0 %v1466_v4  ;;  %567 = vmatpush1.bf16.msra.mxu1 %v1468_v6  ;;  %v1472_v4 = vcombine.low %v136_v57, %v140_v58  ;;  %v1643_v6 = vld [vmem:[#allocation8 + $0x80] sm:$0xff]  }
  0x6c   :  { %595 = vmatprep.subr.bf16.mxu0 %v1415_v8  ;;  %638 = vmatprep.subr.bf16.mxu1 %v1417_v10  ;;  %v1644_v8 = vld [vmem:[#allocation8 + $0x48] sm:$0xff]  }
  0x6d   :  { %v1646_v10 = vld [vmem:[#allocation8 + $0x8] sm:$0xff]  }
  0x6e   :  { %542 = vmatmul.mubr.bf16.vlgmr.msra.gmra.mrb[0].mxu0 %v1927_v7  ;;  %585 = vmatmul.mubr.bf16.vlgmr.msra.gmra.mrb[0].mxu1 %v1927_v7 }
  0x6f   :  { %596 = vmatpush1.bf16.msra.mxu0 %v1414_v13  ;;  %639 = vmatpush1.bf16.msra.mxu1 %v1416_v15  ;;  %v1649_v13 = vld [vmem:[#allocation8 + $0xd0] sm:$0xff]  }
  0x70   :  { %597 = vmatprep.subr.bf16.mxu0 %v1423_v16  ;;  %640 = vmatprep.subr.bf16.mxu1 %v1425_v18  ;;  %v1651_v15 = vld [vmem:[#allocation8 + $0x90] sm:$0xff]   ;;  %v1652_v16 = vld [vmem:[#allocation8 + $0x58] sm:$0xff]  }
  0x71   :  { %627 = vmatprep.mubr.bf16.mxu0 %v1830_v0  ;;  %670 = vmatprep.mubr.bf16.mxu1 %v1830_v0  ;;  %v1447_v0 = vcombine.high %v111_v30, %v115_v33  ;;  %v1654_v18 = vld [vmem:[#allocation8 + $0x18] sm:$0xff]   ;;  %v1667_v30 = vld [vmem:[#allocation8 + $0xb0] sm:$0xff]  }
  0x72   :  { %v1670_v33 = vld [vmem:[#allocation8 + $0x38] sm:$0xff]  }
  0x73   :  { %598 = vmatpush1.bf16.msra.mxu0 %v1422_v21  ;;  %641 = vmatpush1.bf16.msra.mxu1 %v1424_v23  ;;  %v1658_v21 = vld [vmem:[#allocation8 + $0x20] sm:$0xff]   ;;  %v1660_v23 = vld [vmem:[#allocation8 + $0x68] sm:$0xff]  }
  0x74   :  { %599 = vmatprep.subr.bf16.mxu0 %v1431_v24  ;;  %642 = vmatprep.subr.bf16.mxu1 %v1433_v26  ;;  %v1661_v24 = vld [vmem:[#allocation8 + $0xe8] sm:$0xff]  }
  0x75   :  { %v1663_v26 = vld [vmem:[#allocation8 + $0xa8] sm:$0xff]  }
  0x77   :  { %600 = vmatpush1.bf16.msra.mxu0 %v1430_v29  ;;  %643 = vmatpush1.bf16.msra.mxu1 %v1432_v31  ;;  %v1666_v29 = vld [vmem:[#allocation8 + $0x30] sm:$0xff]   ;;  %v1668_v31 = vld [vmem:[#allocation8 + $0x78] sm:$0xff]  }
  0x78   :  { %601 = vmatprep.subr.bf16.mxu0 %v1439_v32  ;;  %644 = vmatprep.subr.bf16.mxu1 %v1441_v34  ;;  %v1669_v32 = vld [vmem:[#allocation8 + $0xf8] sm:$0xff]  }
  0x79   :  { %v1671_v34 = vld [vmem:[#allocation8 + $0xb8] sm:$0xff]  }
  0x7b   :  { %602 = vmatpush1.bf16.msra.mxu0 %v1438_v37  ;;  %645 = vmatpush1.bf16.msra.mxu1 %v1440_v40  ;;  %v143_v37 = vlaneseq  ;;  %v1938_v40 = vld [vmem:[#allocation7] sm:$0xff] }
  0x7c   :  { %603 = vmatprep.subr.bf16.mxu0 %v1447_v0  ;;  %646 = vmatprep.subr.bf16.mxu1 %v1449_v43 }
  0x7d   :  { %v1935_v38 = vshrl.u32 %v143_v37, 7 }
  0x7f   :  { %604 = vmatpush1.bf16.msra.mxu0 %v1446_v44  ;;  %647 = vmatpush1.bf16.msra.mxu1 %v1448_v47  ;;  %v145_v39 = vsub.s32 0, %v1935_v38  ;;  %v153_v0 = vsub.s32 2, %v1935_v38  ;;  %v149_v41 = vsub.s32 1, %v1935_v38  ;;  %v157_v42 = vsub.s32 3, %v1935_v38 }
  0x80   :  { %605 = vmatprep.subr.bf16.mxu0 %v1455_v48  ;;  %648 = vmatprep.subr.bf16.mxu1 %v1457_v51 }
  0x81   :  { %v146_v43 = vrot.slane %v1938_v40, %v145_v39  ;;  %v154_v44 = vrot.slane %v1938_v40, %v153_v0  ;;  %v150_v45 = vrot.slane %v1938_v40, %v149_v41  ;;  %v158_v46 = vrot.slane %v1938_v40, %v157_v42  ;;  %v1695_v39 = vld [vmem:[#allocation8 + $0x1a8] sm:$0xff]   ;;  %v1696_v0 = vld [vmem:[#allocation8 + $0x170] sm:$0xff]  }
  0x83   :  { %606 = vmatpush1.bf16.msra.mxu0 %v1454_v52  ;;  %649 = vmatpush1.bf16.msra.mxu1 %v1456_v55 }
  0x84   :  { %607 = vmatprep.subr.bf16.mxu0 %v1463_v56  ;;  %650 = vmatprep.subr.bf16.mxu1 %v1465_v59 }
  0x87   :  { %608 = vmatpush1.bf16.msra.mxu0 %v1462_v60  ;;  %651 = vmatpush1.bf16.msra.mxu1 %v1464_v61 }
  0x88   :  { %609 = vmatprep.subr.bf16.mxu0 %v1471_v62  ;;  %652 = vmatprep.subr.bf16.mxu1 %v1473_v63 }
  0x8b   :  { %610 = vmatpush1.bf16.msra.mxu0 %v1470_v2  ;;  %653 = vmatpush1.bf16.msra.mxu1 %v1472_v4 }
  0x8c   :  { %1539 = vmatprep.subr.bf16.mxu0 %v1640_v1  ;;  %1561 = vmatprep.subr.bf16.mxu1 %v1641_v3 }
  0x8e   :  { %628 = vmatmul.mubr.bf16.vlgmr.msra.gmra.mrb[4].mxu0 %v1927_v7  ;;  %671 = vmatmul.mubr.bf16.vlgmr.msra.gmra.mrb[4].mxu1 %v1927_v7  ;;  %v1657_v7 = vld [vmem:[#allocation8 + $0xe0] sm:$0xff]  }
  0x8f   :  { %1540 = vmatpush3.bf16.msra.mxu0 %v1642_v5  ;;  %1562 = vmatpush3.bf16.msra.mxu1 %v1643_v6 }
  0x90   :  { %1541 = vmatprep.subr.bf16.mxu0 %v1644_v8  ;;  %1563 = vmatprep.subr.bf16.mxu1 %v1645_v9 }
  0x93   :  { %1542 = vmatpush3.bf16.msra.mxu0 %v1646_v10  ;;  %1564 = vmatpush3.bf16.msra.mxu1 %v1647_v11 }
  0x94   :  { %1543 = vmatprep.subr.bf16.mxu0 %v1648_v12  ;;  %1565 = vmatprep.subr.bf16.mxu1 %v1649_v13  ;;  %v1674_v12 = vld [vmem:[#allocation8 + $0x100] sm:$0xff]  }
  0x97   :  { %1544 = vmatpush3.bf16.msra.mxu0 %v1650_v14  ;;  %1566 = vmatpush3.bf16.msra.mxu1 %v1651_v15  ;;  %v1675_v14 = vld [vmem:[#allocation8 + $0x180] sm:$0xff]   ;;  %v1676_v15 = vld [vmem:[#allocation8 + $0x148] sm:$0xff]  }
  0x98   :  { %1545 = vmatprep.subr.bf16.mxu0 %v1652_v16  ;;  %1567 = vmatprep.subr.bf16.mxu1 %v1653_v17  ;;  %v1677_v16 = vld [vmem:[#allocation8 + $0x1c8] sm:$0xff]  }
  0x99   :  { %v1678_v17 = vld [vmem:[#allocation8 + $0x108] sm:$0xff]  }
  0x9b   :  { %1546 = vmatpush3.bf16.msra.mxu0 %v1654_v18  ;;  %1568 = vmatpush3.bf16.msra.mxu1 %v1655_v19  ;;  %v1679_v18 = vld [vmem:[#allocation8 + $0x188] sm:$0xff]   ;;  %v1680_v19 = vld [vmem:[#allocation8 + $0x150] sm:$0xff]  }
  0x9c   :  { %1547 = vmatprep.subr.bf16.mxu0 %v1656_v20  ;;  %1569 = vmatprep.subr.bf16.mxu1 %v1657_v7  ;;  %v1681_v20 = vld [vmem:[#allocation8 + $0x1d0] sm:$0xff]  }
  0x9d   :  { %v1682_v7 = vld [vmem:[#allocation8 + $0x110] sm:$0xff]  }
  0x9f   :  { %1548 = vmatpush3.bf16.msra.mxu0 %v1658_v21  ;;  %1570 = vmatpush3.bf16.msra.mxu1 %v1659_v22  ;;  %v1683_v21 = vld [vmem:[#allocation8 + $0x190] sm:$0xff]   ;;  %v1684_v22 = vld [vmem:[#allocation8 + $0x158] sm:$0xff]  }
  0xa0   :  { %1549 = vmatprep.subr.bf16.mxu0 %v1660_v23  ;;  %1571 = vmatprep.subr.bf16.mxu1 %v1661_v24  ;;  %v1685_v23 = vld [vmem:[#allocation8 + $0x1d8] sm:$0xff]  }
  0xa1   :  { %v1686_v24 = vld [vmem:[#allocation8 + $0x118] sm:$0xff]  }
  0xa3   :  { %1550 = vmatpush3.bf16.msra.mxu0 %v1662_v25  ;;  %1572 = vmatpush3.bf16.msra.mxu1 %v1663_v26  ;;  %v1687_v25 = vld [vmem:[#allocation8 + $0x198] sm:$0xff]   ;;  %v1688_v26 = vld [vmem:[#allocation8 + $0x160] sm:$0xff]  }
  0xa4   :  { %1551 = vmatprep.subr.bf16.mxu0 %v1664_v27  ;;  %1573 = vmatprep.subr.bf16.mxu1 %v1665_v28  ;;  %v1689_v27 = vld [vmem:[#allocation8 + $0x1e0] sm:$0xff]  }
  0xa5   :  { %v1690_v28 = vld [vmem:[#allocation8 + $0x120] sm:$0xff]  }
  0xa7   :  { %1552 = vmatpush3.bf16.msra.mxu0 %v1666_v29  ;;  %1574 = vmatpush3.bf16.msra.mxu1 %v1667_v30  ;;  %v1691_v29 = vld [vmem:[#allocation8 + $0x1a0] sm:$0xff]   ;;  %v1692_v30 = vld [vmem:[#allocation8 + $0x168] sm:$0xff]  }
  0xa8   :  { %1553 = vmatprep.subr.bf16.mxu0 %v1668_v31  ;;  %1575 = vmatprep.subr.bf16.mxu1 %v1669_v32  ;;  %v161_v31 = vsub.s32 4, %v1935_v38  ;;  %v1693_v32 = vld [vmem:[#allocation8 + $0x1e8] sm:$0xff]  }
  0xaa   :  { %v162_v37 = vrot.slane %v1938_v40, %v161_v31 }
  0xab   :  { %1554 = vmatpush3.bf16.msra.mxu0 %v1670_v33  ;;  %1576 = vmatpush3.bf16.msra.mxu1 %v1671_v34  ;;  %v169_v33 = vsub.s32 6, %v1935_v38  ;;  %v165_v34 = vsub.s32 5, %v1935_v38 }
  0xac   :  { %1583 = vmatprep.subr.bf16.mxu0 %v1672_v35  ;;  %1605 = vmatprep.subr.bf16.mxu1 %v1673_v36  ;;  %v173_v35 = vsub.s32 7, %v1935_v38  ;;  %v1694_v36 = vld [vmem:[#allocation8 + $0x128] sm:$0xff]  }
  0xad   :  { %v170_v41 = vrot.slane %v1938_v40, %v169_v33  ;;  %v166_v42 = vrot.slane %v1938_v40, %v165_v34 }
 0x141   :  { %v543_v47 = vpop.f32.mrb[0].mxu0  ;;  %v586_v49 = vpop.f32.mrb[0].mxu1 }
 0x142   :  { %v544_v48 = vadd.f32 %v543_v47, %v146_v43  ;;  %v545_v50 = vpop.f32.mrb[1].mxu0  ;;  %v587_v51 = vadd.f32 %v586_v49, %v154_v44  ;;  %v588_v53 = vpop.f32.mrb[1].mxu1  ;;  %v1699_v49 = vld [vmem:[#allocation8 + $0x1b0] sm:$0xff]  }
 0x143   :  { %v546_v52 = vadd.f32 %v545_v50, %v150_v45  ;;  %v547_v54 = vpop.f32.mrb[2].mxu0  ;;  %v589_v56 = vadd.f32 %v588_v53, %v158_v46  ;;  %v590_v58 = vpop.f32.mrb[2].mxu1  ;;  %v1700_v50 = vld [vmem:[#allocation8 + $0x178] sm:$0xff]  }
 0x144   :  { %v681_v55 = vmax.f32 %v544_v48, 0.0  ;;  %v548_v57 = vadd.f32 %v547_v54, %v146_v43  ;;  %v549_v59 = vpop.f32.mrb[3].mxu0  ;;  %v683_v60 = vmax.f32 %v587_v51, 0.0  ;;  %v591_v61 = vadd.f32 %v590_v58, %v154_v44  ;;  %v592_v63 = vpop.f32.mrb[3].mxu1  ;;  %v1697_v43 = vld [vmem:[#allocation8 + $0x1f0] sm:$0xff]  }
 0x145   :  { %v550_v62 = vadd.f32 %v549_v59, %v150_v45  ;;  %v684_v1 = vmax.f32 %v589_v56, 0.0  ;;  %v593_v3 = vadd.f32 %v592_v63, %v158_v46  ;;  %v682_v4 = vmax.f32 %v546_v52, 0.0  ;;  %v1698_v46 = vld [vmem:[#allocation8 + $0x130] sm:$0xff]   ;;  %v1702_v63 = vld [vmem:[#allocation8 + $0x138] sm:$0xff]  }
 0x146   :  { %v689_v2 = vmax.f32 %v548_v57, 0.0  ;;  %v691_v5 = vmax.f32 %v591_v61, 0.0  ;;  %v174_v44 = vrot.slane %v1938_v40, %v173_v35 }
 0x147   :  { %v690_v6 = vmax.f32 %v550_v62, 0.0  ;;  %v692_v9 = vmax.f32 %v593_v3, 0.0 }
 0x148   :  { %v697_v8 = vpack.c.bf16 %v689_v2, %v681_v55  ;;  %v699_v10 = vpack.c.bf16 %v691_v5, %v683_v60  ;;  %v1701_v55 = vld [vmem:[#allocation8 + $0x1f8] sm:$0xff]  }
 0x149   :  { %v698_v11 = vpack.c.bf16 %v690_v6, %v682_v4  ;;  %v700_v13 = vpack.c.bf16 %v692_v9, %v684_v1  ;;  %v1703_v5 = vld [vmem:[#allocation8 + $0x1b8] sm:$0xff]  }
 0x14b   :  { %1256 = vmatprep.mubr.bf16.mxu0 %v698_v11  ;;  %1297 = vmatprep.mubr.bf16.mxu1 %v700_v13 }
 0x14c   :  { %1257 = vmatmul.mubr.bf16.vlgmr.msra.gmra.mrb[8].mxu0 %v697_v8  ;;  %1298 = vmatmul.mubr.bf16.vlgmr.msra.gmra.mrb[8].mxu1 %v699_v10 }
 0x14d   :  { %1584 = vmatpush3.bf16.msra.mxu0 %v1674_v12  ;;  %1606 = vmatpush3.bf16.msra.mxu1 %v1675_v14 }
 0x14e   :  { %1585 = vmatprep.subr.bf16.mxu0 %v1676_v15  ;;  %1607 = vmatprep.subr.bf16.mxu1 %v1677_v16 }
 0x151   :  { %1586 = vmatpush3.bf16.msra.mxu0 %v1678_v17  ;;  %1608 = vmatpush3.bf16.msra.mxu1 %v1679_v18  ;;  %v1474_v17 = vld [vmem:[%s1974_s4] ss:$0 sm:$0xff]  ;;  %s1831_s4 = smov [#allocation10]  }
 0x152   :  { %1587 = vmatprep.subr.bf16.mxu0 %v1680_v19  ;;  %1609 = vmatprep.subr.bf16.mxu1 %v1681_v20  ;;  %s1395_s17 = sshll.u32 %s1831_s4, 4  ;;  %s1396_s17 = int_to_ptr.vmem [resolvable:$true] %s1395_s17 }
 0x153   :  { %s1792_s18 = scalar_lea.vmem %s1396_s17, 256  ;;  %p1797_p5 = scmp.lt.s32.totalorder %s1396_s17, %s1396_s17 }
 0x154   :  { %p1793_p4 = scmp.ne.s32.totalorder %s1396_s17, %s1792_s18  ;;  %p1798_p6 = scmp.lt.s32.totalorder %s1792_s18, %s1792_s18 }
 0x155   :  { %1588 = vmatpush3.bf16.msra.mxu0 %v1682_v7  ;;  %1610 = vmatpush3.bf16.msra.mxu1 %v1683_v21 }
 0x156   :  { %1589 = vmatprep.subr.bf16.mxu0 %v1684_v22  ;;  %1611 = vmatprep.subr.bf16.mxu1 %v1685_v23  ;;  %p1799_p7 = por %p1798_p6, %p1797_p5 }
 0x158   :  { %p1800_p8 = pnand %p1799_p7, %p1793_p4 }
 0x159   :  { %1590 = vmatpush3.bf16.msra.mxu0 %v1686_v24  ;;  %1612 = vmatpush3.bf16.msra.mxu1 %v1687_v25 }
 0x15a   :  { %1591 = vmatprep.subr.bf16.mxu0 %v1688_v26  ;;  %1613 = vmatprep.subr.bf16.mxu1 %v1689_v27 }
 0x15d   :  { %1592 = vmatpush3.bf16.msra.mxu0 %v1690_v28  ;;  %1614 = vmatpush3.bf16.msra.mxu1 %v1691_v29 }
 0x15e   :  { %1593 = vmatprep.subr.bf16.mxu0 %v1692_v30  ;;  %1615 = vmatprep.subr.bf16.mxu1 %v1693_v32 }
 0x161   :  { %v629_v45 = vpop.f32.mrb[4].mxu0  ;;  %1594 = vmatpush3.bf16.msra.mxu0 %v1694_v36  ;;  %v672_v47 = vpop.f32.mrb[4].mxu1  ;;  %1616 = vmatpush3.bf16.msra.mxu1 %v1695_v39 }
 0x162   :  { %v630_v38 = vadd.f32 %v629_v45, %v162_v37  ;;  %v631_v48 = vpop.f32.mrb[5].mxu0  ;;  %1595 = vmatprep.subr.bf16.mxu0 %v1696_v0  ;;  %v673_v51 = vadd.f32 %v672_v47, %v170_v41  ;;  %v674_v53 = vpop.f32.mrb[5].mxu1  ;;  %1617 = vmatprep.subr.bf16.mxu1 %v1697_v43 }
 0x163   :  { %v632_v52 = vadd.f32 %v631_v48, %v166_v42  ;;  %v633_v54 = vpop.f32.mrb[6].mxu0  ;;  %v675_v56 = vadd.f32 %v674_v53, %v174_v44  ;;  %v676_v58 = vpop.f32.mrb[6].mxu1 }
 0x164   :  { %v634_v57 = vadd.f32 %v633_v54, %v162_v37  ;;  %v635_v40 = vpop.f32.mrb[7].mxu0  ;;  %v687_v59 = vmax.f32 %v673_v51, 0.0  ;;  %v677_v60 = vadd.f32 %v676_v58, %v170_v41  ;;  %v678_v62 = vpop.f32.mrb[7].mxu1  ;;  %v685_v1 = vmax.f32 %v630_v38, 0.0 }
 0x165   :  { %v636_v61 = vadd.f32 %v635_v40, %v166_v42  ;;  %1596 = vmatpush3.bf16.msra.mxu0 %v1698_v46  ;;  %v688_v2 = vmax.f32 %v675_v56, 0.0  ;;  %v679_v4 = vadd.f32 %v678_v62, %v174_v44  ;;  %1618 = vmatpush3.bf16.msra.mxu1 %v1699_v49  ;;  %v686_v6 = vmax.f32 %v632_v52, 0.0 }
 0x166   :  { %v693_v3 = vmax.f32 %v634_v57, 0.0  ;;  %1597 = vmatprep.subr.bf16.mxu0 %v1700_v50  ;;  %v695_v8 = vmax.f32 %v677_v60, 0.0  ;;  %1619 = vmatprep.subr.bf16.mxu1 %v1701_v55 }
 0x167   :  { %v694_v9 = vmax.f32 %v636_v61, 0.0  ;;  %v696_v11 = vmax.f32 %v679_v4, 0.0 }
 0x168   :  { %v701_v10 = vpack.c.bf16 %v693_v3, %v685_v1  ;;  %v703_v12 = vpack.c.bf16 %v695_v8, %v687_v59 }
 0x169   :  { %v702_v13 = vpack.c.bf16 %v694_v9, %v686_v6  ;;  %1598 = vmatpush3.bf16.msra.mxu0 %v1702_v63  ;;  %v704_v14 = vpack.c.bf16 %v696_v11, %v688_v2  ;;  %1620 = vmatpush3.bf16.msra.mxu1 %v1703_v5 }
 0x16b   :  { %1338 = vmatprep.mubr.bf16.mxu0 %v702_v13  ;;  %1379 = vmatprep.mubr.bf16.mxu1 %v704_v14 }
 0x16c   :  { %1339 = vmatmul.mubr.bf16.vlgmr.msra.gmra.mrb[12].mxu0 %v701_v10  ;;  %1380 = vmatmul.mubr.bf16.vlgmr.msra.gmra.mrb[12].mxu1 %v703_v12 }
 0x21f   :  { %v1555_v15 = vpop.f32.mrb[8].mxu0  ;;  %v1577_v16 = vpop.f32.mrb[8].mxu1 }
 0x220   :  { %v1556_v18 = vpop.f32.mrb[9].mxu0  ;;  %v1578_v20 = vpop.f32.mrb[9].mxu1 }
 0x221   :  { %v1557_v19 = vadd.f32 %v1556_v18, %v1555_v15  ;;  %v1558_v7 = vpop.f32.mrb[10].mxu0  ;;  %v1579_v21 = vadd.f32 %v1578_v20, %v1577_v16  ;;  %v1580_v22 = vpop.f32.mrb[10].mxu1 }
 0x222   :  { %v1559_v23 = vpop.f32.mrb[11].mxu0  ;;  %v1581_v26 = vpop.f32.mrb[11].mxu1 }
 0x223   :  { %v1259_v24 = vadd.f32 %v1557_v19, %v1474_v17  ;;  %v1560_v25 = vadd.f32 %v1559_v23, %v1558_v7  ;;  %v1582_v27 = vadd.f32 %v1581_v26, %v1580_v22 }
 0x225   :  { %v1300_v28 = vadd.f32 %v1579_v21, %v1259_v24  ;;  %v1262_v29 = vadd.f32 %v1560_v25, %v1474_v17 }
 0x227   :  { %v1303_v30 = vadd.f32 %v1582_v27, %v1262_v29 }
 0x23f   :  { %v1599_v31 = vpop.f32.mrb[12].mxu0  ;;  %v1621_v32 = vpop.f32.mrb[12].mxu1 }
 0x240   :  { %v1600_v33 = vpop.f32.mrb[13].mxu0  ;;  %v1622_v35 = vpop.f32.mrb[13].mxu1 }
 0x241   :  { %v1601_v34 = vadd.f32 %v1600_v33, %v1599_v31  ;;  %v1602_v36 = vpop.f32.mrb[14].mxu0  ;;  %v1623_v37 = vadd.f32 %v1622_v35, %v1621_v32  ;;  %v1624_v39 = vpop.f32.mrb[14].mxu1 }
 0x242   :  { %v1603_v0 = vpop.f32.mrb[15].mxu0  ;;  %v1625_v43 = vpop.f32.mrb[15].mxu1 }
 0x243   :  { %v1341_v41 = vadd.f32 %v1601_v34, %v1300_v28  ;;  %v1604_v42 = vadd.f32 %v1603_v0, %v1602_v36  ;;  %v1626_v44 = vadd.f32 %v1625_v43, %v1624_v39 }
 0x245   :  { %v1382_v45 = vadd.f32 %v1623_v37, %v1341_v41  ;;  %v1344_v46 = vadd.f32 %v1604_v42, %v1303_v30 }
 0x247   :  { %1388 = vst [vmem:[#allocation10] sm:$0xff] %v1382_v45  ;;  %v1385_v38 = vadd.f32 %v1626_v44, %v1344_v46 }
 0x249   :  { %1389 = vst [vmem:[#allocation10 + $0x8] sm:$0xff] %v1385_v38 }
 0x24a   :  { %1803 = shalt.err (!%p1800_p8)
}
 0x24b   :  { %s1804_s21 = scalar_lea.hbm %s1975_s5, 256 }
 0x24c   :  { %p1805_p9 = scmp.ne.s32.totalorder %s1975_s5, %s1804_s21  ;;  %p1808_p10 = scmp.lt.u32.totalorder %s1804_s21, %s1975_s5 }
 0x24e   :  { %p1810_p11 = pnand %p1808_p10, %p1805_p9 }
 0x250   :  { %1813 = shalt.err (!%p1810_p11)
}
 0x251   :  { %s1832_s26 = smov 128   ;;  %s1833_s27 = smov 8  }
 0x252   :  { %1401 = dma.vmem_to_hbm [thread:$0]  %s1396_s17, 256, %s1975_s5, [#allocation4], %s1832_s26, %s1832_s26, %s1833_s27  }
 0x253   :  { %1820 = dma.done.wait [#allocation4], 256  }
 0x254   :  { %1821 = vsyncadd [#allocation4], 4294967040 }
 0x255   :  { %1405 = vsyncpa [#allocation3], 1 }
 0x256   :  { %1406 = vsyncpa [#allocation6], 1 }
 0x257   :  { %1407 = vsyncpa [#allocation9], 1 }
 0x258   :  { %1408 = vsyncpa [#allocation4], 1 }

// kernel: tpu_custom_call.1
= control target key start
LH: loop header
LB: loop body
LE: loop exit
PB: predicated region body
PF: predicated region fallthrough
CT: control target
= control target key end

     0   :  { %10 = vsyncpa [#allocation3], 0  ;;  %s1970_s0 = inlined_call_operand.hbm [shape: bf16[16,128], index: 0, kind: input, shape index: {}]   ;;  %s1971_s1 = inlined_call_operand.hbm [shape: bf16[128,1024], index: 1, kind: input, shape index: {}]   ;;  %s1972_s2 = inlined_call_operand.hbm [shape: f32[1,1024], index: 2, kind: input, shape index: {}]   ;;  %s1973_s3 = inlined_call_operand.hbm [shape: bf16[1024,128], index: 3, kind: input, shape index: {}]   ;;  %s1974_s4 = inlined_call_operand.vmem [shape: f32[1,128], index: 4, kind: input, shape index: {}]   ;;  %s1975_s5 = inlined_call_operand.hbm [shape: f32[16,128], index: 5, kind: output, shape index: {}]  }
   0x1   :  { %11 = vsyncpa [#allocation6], 0 }
   0x2   :  { %12 = vsyncpa [#allocation9], 0 }
   0x3   :  { %13 = vsyncpa [#allocation4], 0  ;;  %s1822_s18 = smov [#allocation5]   ;;  %s1704_s22 = scalar_lea.hbm %s1971_s1, 8192 }
   0x4   :  { %s31_s19 = sshll.u32 %s1822_s18, 4  ;;  %p1705_p0 = scmp.ne.s32.totalorder %s1971_s1, %s1704_s22  ;;  %s32_s19 = int_to_ptr.vmem [resolvable:$true] %s31_s19 }
   0x5   :  { %p1708_p1 = scmp.lt.u32.totalorder %s1704_s22, %s1971_s1 }
   0x7   :  { %p1710_p2 = pnand %p1708_p1, %p1705_p0 }
   0x9   :  { %1713 = shalt.err (!%p1710_p2)
}
   0xa   :  { %s1714_s27 = scalar_lea.vmem %s32_s19, 8192  ;;  %p1719_p4 = scmp.lt.s32.totalorder %s32_s19, %s32_s19 }
   0xb   :  { %p1715_p3 = scmp.ne.s32.totalorder %s32_s19, %s1714_s27  ;;  %p1720_p5 = scmp.lt.s32.totalorder %s1714_s27, %s1714_s27 }
   0xd   :  { %p1721_p6 = por %p1720_p5, %p1719_p4 }
   0xf   :  { %p1722_p7 = pnand %p1721_p6, %p1715_p3 }
  0x11   :  { %1725 = shalt.err (!%p1722_p7)
}
  0x12   :  { %s1823_s28 = smov 512   ;;  %s1824_s29 = smov 32  }
  0x13   :  { %37 = dma.hbm_to_vmem [thread:$0]  %s1971_s1, 8192, %s32_s19, [#allocation6], %s1823_s28, %s1823_s28, %s1824_s29  }
  0x14   :  { %s1825_s7 = smov [#allocation2]   ;;  %s1726_s11 = scalar_lea.hbm %s1970_s0, 128 }
  0x15   :  { %s19_s8 = sshll.u32 %s1825_s7, 4  ;;  %p1727_p8 = scmp.ne.s32.totalorder %s1970_s0, %s1726_s11  ;;  %s20_s8 = int_to_ptr.vmem [resolvable:$true] %s19_s8 }
  0x16   :  { %p1730_p9 = scmp.lt.u32.totalorder %s1726_s11, %s1970_s0 }
  0x18   :  { %p1732_p10 = pnand %p1730_p9, %p1727_p8 }
  0x1a   :  { %1735 = shalt.err (!%p1732_p10)
}
  0x1b   :  { %s1736_s16 = scalar_lea.vmem %s20_s8, 128  ;;  %p1741_p12 = scmp.lt.s32.totalorder %s20_s8, %s20_s8 }
  0x1c   :  { %p1737_p11 = scmp.ne.s32.totalorder %s20_s8, %s1736_s16  ;;  %p1742_p13 = scmp.lt.s32.totalorder %s1736_s16, %s1736_s16 }
  0x1e   :  { %p1743_p0 = por %p1742_p13, %p1741_p12 }
  0x20   :  { %p1744_p1 = pnand %p1743_p0, %p1737_p11 }
  0x22   :  { %1747 = shalt.err (!%p1744_p1)
}
  0x23   :  { %s1826_s1 = smov 64   ;;  %s1827_s17 = smov 4  }
  0x24   :  { %25 = dma.hbm_to_vmem [thread:$0]  %s1970_s0, 128, %s20_s8, [#allocation3], %s1826_s1, %s1826_s1, %s1827_s17  }
  0x25   :  { %s1828_s20 = smov [#allocation7]   ;;  %s1829_s22 = smov [#allocation8]  }
  0x26   :  { %s44_s21 = sshll.u32 %s1828_s20, 4  ;;  %s53_s23 = sshll.u32 %s1829_s22, 4  ;;  %s45_s21 = int_to_ptr.vmem [resolvable:$true] %s44_s21  ;;  %s1891_s23 = int_to_ptr.vmem [resolvable:$true] %s53_s23 }
  0x27   :  { %s1748_s26 = scalar_lea.hbm %s1972_s2, 128 }
  0x28   :  { %p1749_p2 = scmp.ne.s32.totalorder %s1972_s2, %s1748_s26  ;;  %p1752_p3 = scmp.lt.u32.totalorder %s1748_s26, %s1972_s2 }
  0x2a   :  { %p1754_p4 = pnand %p1752_p3, %p1749_p2 }
  0x2c   :  { %1757 = shalt.err (!%p1754_p4)
}
  0x2d   :  { %s1758_s0 = scalar_lea.vmem %s45_s21, 128  ;;  %p1763_p6 = scmp.lt.s32.totalorder %s45_s21, %s45_s21 }
  0x2e   :  { %p1759_p5 = scmp.ne.s32.totalorder %s45_s21, %s1758_s0  ;;  %p1764_p7 = scmp.lt.s32.totalorder %s1758_s0, %s1758_s0 }
  0x30   :  { %p1765_p8 = por %p1764_p7, %p1763_p6 }
  0x32   :  { %p1766_p9 = pnand %p1765_p8, %p1759_p5 }
  0x34   :  { %1769 = shalt.err (!%p1766_p9)
}
  0x35   :  { %47 = dma.hbm_to_vmem [thread:$0]  %s1972_s2, 128, %s45_s21, [#allocation6]  }
  0x36   :  { %s1770_s10 = scalar_lea.hbm %s1973_s3, 8192 }
  0x37   :  { %p1771_p10 = scmp.ne.s32.totalorder %s1973_s3, %s1770_s10  ;;  %p1774_p11 = scmp.lt.u32.totalorder %s1770_s10, %s1973_s3 }
  0x39   :  { %p1776_p12 = pnand %p1774_p11, %p1771_p10 }
  0x3b   :  { %1779 = shalt.err (!%p1776_p12)
}
  0x3c   :  { %s1780_s15 = scalar_lea.vmem %s1891_s23, 8192  ;;  %p1785_p0 = scmp.lt.s32.totalorder %s1891_s23, %s1891_s23 }
  0x3d   :  { %p1781_p13 = scmp.ne.s32.totalorder %s1891_s23, %s1780_s15  ;;  %p1786_p1 = scmp.lt.s32.totalorder %s1780_s15, %s1780_s15 }
  0x3f   :  { %p1787_p2 = por %p1786_p1, %p1785_p0 }
  0x41   :  { %p1788_p3 = pnand %p1787_p2, %p1781_p13 }
  0x43   :  { %1791 = shalt.err (!%p1788_p3)
}
  0x44   :  { %59 = dma.hbm_to_vmem [thread:$0]  %s1973_s3, 8192, %s1891_s23, [#allocation9], %s1826_s1, %s1826_s1, %s1827_s17  }
  0x45   :  { %1814 = dma.done.wait [#allocation3], 128  }
  0x46   :  { %1815 = vsyncadd [#allocation3], 4294967168 }
  0x47   :  { %1816 = dma.done.wait [#allocation6], 8320  }
  0x48   :  { %1817 = vsyncadd [#allocation6], 4294958976 }
  0x49   :  { %1818 = dma.done.wait [#allocation9], 8192  }
  0x4a   :  { %1819 = vsyncadd [#allocation9], 4294959104  ;;  %v1830_v0 = vmov 0   ;;  %v77_v1 = vld [vmem:[#allocation5] sm:$0xff]  ;;  %v78_v3 = vld [vmem:[#allocation5 + $0x8] sm:$0xff] }
  0x4b   :  { %541 = vmatprep.mubr.bf16.mxu0 %v1830_v0  ;;  %584 = vmatprep.mubr.bf16.mxu1 %v1830_v0  ;;  %v81_v2 = vld [vmem:[#allocation5 + $0x20] sm:$0xff]  ;;  %v82_v5 = vld [vmem:[#allocation5 + $0x28] sm:$0xff]  ;;  %v79_v60 = vld [vmem:[#allocation5 + $0x10] sm:$0xff] }
  0x4c   :  { %v1411_v4 = vcombine.high %v77_v1, %v81_v2  ;;  %v1410_v6 = vcombine.low %v77_v1, %v81_v2  ;;  %v85_v7 = vld [vmem:[#allocation5 + $0x40] sm:$0xff]  ;;  %v1413_v9 = vcombine.high %v78_v3, %v82_v5  ;;  %v1412_v10 = vcombine.low %v78_v3, %v82_v5  ;;  %v86_v12 = vld [vmem:[#allocation5 + $0x48] sm:$0xff]  ;;  %v83_v63 = vld [vmem:[#allocation5 + $0x30] sm:$0xff] }
  0x4d   :  { %v89_v8 = vld [vmem:[#allocation5 + $0x60] sm:$0xff]  ;;  %v90_v13 = vld [vmem:[#allocation5 + $0x68] sm:$0xff]  ;;  %v80_v2 = vld [vmem:[#allocation5 + $0x18] sm:$0xff] }
  0x4e   :  { %v1419_v11 = vcombine.high %v85_v7, %v89_v8  ;;  %v93_v14 = vld [vmem:[#allocation5 + $0x80] sm:$0xff]  ;;  %509 = vmatprep.subr.bf16.mxu0 %v1411_v4  ;;  %v1421_v15 = vcombine.high %v86_v12, %v90_v13  ;;  %v94_v17 = vld [vmem:[#allocation5 + $0x88] sm:$0xff]  ;;  %552 = vmatprep.subr.bf16.mxu1 %v1413_v9  ;;  %v1418_v19 = vcombine.low %v85_v7, %v89_v8  ;;  %v84_v3 = vld [vmem:[#allocation5 + $0x38] sm:$0xff] }
  0x4f   :  { %v97_v16 = vld [vmem:[#allocation5 + $0xa0] sm:$0xff]  ;;  %v98_v18 = vld [vmem:[#allocation5 + $0xa8] sm:$0xff]  ;;  %510 = vmatpush1.bf16.msra.mxu0 %v1410_v6  ;;  %553 = vmatpush1.bf16.msra.mxu1 %v1412_v10  ;;  %v1420_v20 = vcombine.low %v86_v12, %v90_v13  ;;  %v87_v5 = vld [vmem:[#allocation5 + $0x50] sm:$0xff]  ;;  %v1415_v8 = vcombine.high %v79_v60, %v83_v63  ;;  %v1417_v10 = vcombine.high %v80_v2, %v84_v3 }
  0x50   :  { %511 = vmatprep.subr.bf16.mxu0 %v1419_v11  ;;  %v1427_v21 = vcombine.high %v93_v14, %v97_v16  ;;  %554 = vmatprep.subr.bf16.mxu1 %v1421_v15  ;;  %v1429_v22 = vcombine.high %v94_v17, %v98_v18  ;;  %v101_v23 = vld [vmem:[#allocation5 + $0xc0] sm:$0xff]  ;;  %v102_v25 = vld [vmem:[#allocation5 + $0xc8] sm:$0xff]  ;;  %v1426_v27 = vcombine.low %v93_v14, %v97_v16  ;;  %v1927_v7 = vld [vmem:[#allocation2] sm:$0xff]  }
  0x51   :  { %v105_v24 = vld [vmem:[#allocation5 + $0xe0] sm:$0xff]  ;;  %v106_v26 = vld [vmem:[#allocation5 + $0xe8] sm:$0xff]  ;;  %v1428_v28 = vcombine.low %v94_v17, %v98_v18  ;;  %v91_v9 = vld [vmem:[#allocation5 + $0x70] sm:$0xff]  ;;  %v1414_v13 = vcombine.low %v79_v60, %v83_v63  ;;  %v1416_v15 = vcombine.low %v80_v2, %v84_v3 }
  0x52   :  { %v1435_v29 = vcombine.high %v101_v23, %v105_v24  ;;  %v1437_v30 = vcombine.high %v102_v25, %v106_v26  ;;  %v109_v31 = vld [vmem:[#allocation5 + $0x100] sm:$0xff]  ;;  %v110_v33 = vld [vmem:[#allocation5 + $0x108] sm:$0xff]  ;;  %v1434_v35 = vcombine.low %v101_v23, %v105_v24  ;;  %v1436_v36 = vcombine.low %v102_v25, %v106_v26  ;;  %v88_v11 = vld [vmem:[#allocation5 + $0x58] sm:$0xff] }
  0x53   :  { %512 = vmatpush1.bf16.msra.mxu0 %v1418_v19  ;;  %555 = vmatpush1.bf16.msra.mxu1 %v1420_v20  ;;  %v113_v32 = vld [vmem:[#allocation5 + $0x120] sm:$0xff]  ;;  %v114_v34 = vld [vmem:[#allocation5 + $0x128] sm:$0xff]  ;;  %v92_v12 = vld [vmem:[#allocation5 + $0x78] sm:$0xff]  ;;  %v1423_v16 = vcombine.high %v87_v5, %v91_v9 }
  0x54   :  { %513 = vmatprep.subr.bf16.mxu0 %v1427_v21  ;;  %556 = vmatprep.subr.bf16.mxu1 %v1429_v22  ;;  %v1443_v37 = vcombine.high %v109_v31, %v113_v32  ;;  %v1445_v38 = vcombine.high %v110_v33, %v114_v34  ;;  %v117_v39 = vld [vmem:[#allocation5 + $0x140] sm:$0xff]  ;;  %v118_v41 = vld [vmem:[#allocation5 + $0x148] sm:$0xff]  ;;  %v1442_v43 = vcombine.low %v109_v31, %v113_v32  ;;  %v95_v14 = vld [vmem:[#allocation5 + $0x90] sm:$0xff] }
  0x55   :  { %v121_v40 = vld [vmem:[#allocation5 + $0x160] sm:$0xff]  ;;  %v122_v42 = vld [vmem:[#allocation5 + $0x168] sm:$0xff]  ;;  %v1444_v44 = vcombine.low %v110_v33, %v114_v34  ;;  %v99_v17 = vld [vmem:[#allocation5 + $0xb0] sm:$0xff]  ;;  %v1425_v18 = vcombine.high %v88_v11, %v92_v12  ;;  %v1422_v21 = vcombine.low %v87_v5, %v91_v9  ;;  %v1424_v23 = vcombine.low %v88_v11, %v92_v12 }
  0x56   :  { %v1451_v45 = vcombine.high %v117_v39, %v121_v40  ;;  %v1453_v46 = vcombine.high %v118_v41, %v122_v42  ;;  %v125_v47 = vld [vmem:[#allocation5 + $0x180] sm:$0xff]  ;;  %v126_v49 = vld [vmem:[#allocation5 + $0x188] sm:$0xff]  ;;  %v1450_v51 = vcombine.low %v117_v39, %v121_v40  ;;  %v1452_v52 = vcombine.low %v118_v41, %v122_v42  ;;  %v96_v19 = vld [vmem:[#allocation5 + $0x98] sm:$0xff] }
  0x57   :  { %514 = vmatpush1.bf16.msra.mxu0 %v1426_v27  ;;  %557 = vmatpush1.bf16.msra.mxu1 %v1428_v28  ;;  %v129_v48 = vld [vmem:[#allocation5 + $0x1a0] sm:$0xff]  ;;  %v130_v50 = vld [vmem:[#allocation5 + $0x1a8] sm:$0xff]  ;;  %v100_v20 = vld [vmem:[#allocation5 + $0xb8] sm:$0xff]  ;;  %v1431_v24 = vcombine.high %v95_v14, %v99_v17 }
  0x58   :  { %515 = vmatprep.subr.bf16.mxu0 %v1435_v29  ;;  %558 = vmatprep.subr.bf16.mxu1 %v1437_v30  ;;  %v1459_v53 = vcombine.high %v125_v47, %v129_v48  ;;  %v133_v54 = vld [vmem:[#allocation5 + $0x1c0] sm:$0xff]  ;;  %v1461_v56 = vcombine.high %v126_v49, %v130_v50  ;;  %v134_v57 = vld [vmem:[#allocation5 + $0x1c8] sm:$0xff]  ;;  %v1458_v59 = vcombine.low %v125_v47, %v129_v48  ;;  %v103_v22 = vld [vmem:[#allocation5 + $0xd0] sm:$0xff] }
  0x59   :  { %v137_v55 = vld [vmem:[#allocation5 + $0x1e0] sm:$0xff]  ;;  %v138_v58 = vld [vmem:[#allocation5 + $0x1e8] sm:$0xff]  ;;  %v1460_v61 = vcombine.low %v126_v49, %v130_v50  ;;  %v107_v25 = vld [vmem:[#allocation5 + $0xf0] sm:$0xff]  ;;  %v1433_v26 = vcombine.high %v96_v19, %v100_v20  ;;  %v1430_v29 = vcombine.low %v95_v14, %v99_v17  ;;  %v1432_v31 = vcombine.low %v96_v19, %v100_v20 }
  0x5a   :  { %v1467_v62 = vcombine.high %v133_v54, %v137_v55  ;;  %v1469_v1 = vcombine.high %v134_v57, %v138_v58  ;;  %v1466_v4 = vcombine.low %v133_v54, %v137_v55  ;;  %v1468_v6 = vcombine.low %v134_v57, %v138_v58  ;;  %v104_v27 = vld [vmem:[#allocation5 + $0xd8] sm:$0xff]  ;;  %v111_v30 = vld [vmem:[#allocation5 + $0x110] sm:$0xff]  ;;  %v1641_v3 = vld [vmem:[#allocation8 + $0xc0] sm:$0xff]  }
  0x5b   :  { %516 = vmatpush1.bf16.msra.mxu0 %v1434_v35  ;;  %559 = vmatpush1.bf16.msra.mxu1 %v1436_v36  ;;  %v108_v28 = vld [vmem:[#allocation5 + $0xf8] sm:$0xff]  ;;  %v1439_v32 = vcombine.high %v103_v22, %v107_v25  ;;  %v115_v33 = vld [vmem:[#allocation5 + $0x130] sm:$0xff]  ;;  %v1642_v5 = vld [vmem:[#allocation8] sm:$0xff]  }
  0x5c   :  { %517 = vmatprep.subr.bf16.mxu0 %v1443_v37  ;;  %560 = vmatprep.subr.bf16.mxu1 %v1445_v38  ;;  %v1441_v34 = vcombine.high %v104_v27, %v108_v28  ;;  %v112_v35 = vld [vmem:[#allocation5 + $0x118] sm:$0xff]  ;;  %v1438_v37 = vcombine.low %v103_v22, %v107_v25  ;;  %v119_v38 = vld [vmem:[#allocation5 + $0x150] sm:$0xff]  ;;  %v1440_v40 = vcombine.low %v104_v27, %v108_v28  ;;  %v1653_v17 = vld [vmem:[#allocation8 + $0xd8] sm:$0xff]  }
  0x5d   :  { %v116_v36 = vld [vmem:[#allocation5 + $0x138] sm:$0xff]  ;;  %v123_v39 = vld [vmem:[#allocation5 + $0x170] sm:$0xff]  ;;  %v1655_v19 = vld [vmem:[#allocation8 + $0x98] sm:$0xff]  }
  0x5e   :  { %v120_v41 = vld [vmem:[#allocation5 + $0x158] sm:$0xff]  ;;  %v1448_v47 = vcombine.low %v112_v35, %v116_v36  ;;  %v1455_v48 = vcombine.high %v119_v38, %v123_v39  ;;  %v139_v54 = vld [vmem:[#allocation5 + $0x1f0] sm:$0xff]  ;;  %v1656_v20 = vld [vmem:[#allocation8 + $0x60] sm:$0xff]  }
  0x5f   :  { %518 = vmatpush1.bf16.msra.mxu0 %v1442_v43  ;;  %561 = vmatpush1.bf16.msra.mxu1 %v1444_v44  ;;  %v124_v42 = vld [vmem:[#allocation5 + $0x178] sm:$0xff]  ;;  %v1449_v43 = vcombine.high %v112_v35, %v116_v36  ;;  %v1446_v44 = vcombine.low %v111_v30, %v115_v33  ;;  %v1645_v9 = vld [vmem:[#allocation8 + $0xc8] sm:$0xff]   ;;  %v1659_v22 = vld [vmem:[#allocation8 + $0xa0] sm:$0xff]  }
  0x60   :  { %519 = vmatprep.subr.bf16.mxu0 %v1451_v45  ;;  %562 = vmatprep.subr.bf16.mxu1 %v1453_v46  ;;  %v127_v45 = vld [vmem:[#allocation5 + $0x190] sm:$0xff]  ;;  %v128_v49 = vld [vmem:[#allocation5 + $0x198] sm:$0xff]  ;;  %v1456_v55 = vcombine.low %v120_v41, %v124_v42  ;;  %v1672_v35 = vld [vmem:[#allocation8 + $0x140] sm:$0xff]  }
  0x61   :  { %v131_v46 = vld [vmem:[#allocation5 + $0x1b0] sm:$0xff]  ;;  %v132_v50 = vld [vmem:[#allocation5 + $0x1b8] sm:$0xff]  ;;  %v1673_v36 = vld [vmem:[#allocation8 + $0x1c0] sm:$0xff]  }
  0x62   :  { %v136_v57 = vld [vmem:[#allocation5 + $0x1d8] sm:$0xff]  ;;  %v1462_v60 = vcombine.low %v127_v45, %v131_v46  ;;  %v1647_v11 = vld [vmem:[#allocation8 + $0x88] sm:$0xff]  }
  0x63   :  { %520 = vmatpush1.bf16.msra.mxu0 %v1450_v51  ;;  %563 = vmatpush1.bf16.msra.mxu1 %v1452_v52  ;;  %v1457_v51 = vcombine.high %v120_v41, %v124_v42  ;;  %v1454_v52 = vcombine.low %v119_v38, %v123_v39  ;;  %v140_v58 = vld [vmem:[#allocation5 + $0x1f8] sm:$0xff]  ;;  %v1662_v25 = vld [vmem:[#allocation8 + $0x28] sm:$0xff]  }
  0x64   :  { %521 = vmatprep.subr.bf16.mxu0 %v1459_v53  ;;  %564 = vmatprep.subr.bf16.mxu1 %v1461_v56  ;;  %v135_v53 = vld [vmem:[#allocation5 + $0x1d0] sm:$0xff]  ;;  %v1463_v56 = vcombine.high %v127_v45, %v131_v46  ;;  %v1473_v63 = vcombine.high %v136_v57, %v140_v58  ;;  %v1648_v12 = vld [vmem:[#allocation8 + $0x50] sm:$0xff]  }
  0x65   :  { %v1470_v2 = vcombine.low %v135_v53, %v139_v54  ;;  %v1650_v14 = vld [vmem:[#allocation8 + $0x10] sm:$0xff]  }
  0x66   :  { %v1664_v27 = vld [vmem:[#allocation8 + $0x70] sm:$0xff]  }
  0x67   :  { %522 = vmatpush1.bf16.msra.mxu0 %v1458_v59  ;;  %565 = vmatpush1.bf16.msra.mxu1 %v1460_v61  ;;  %v1465_v59 = vcombine.high %v128_v49, %v132_v50  ;;  %v1464_v61 = vcombine.low %v128_v49, %v132_v50  ;;  %v1665_v28 = vld [vmem:[#allocation8 + $0xf0] sm:$0xff]  }
  0x68   :  { %523 = vmatprep.subr.bf16.mxu0 %v1467_v62  ;;  %566 = vmatprep.subr.bf16.mxu1 %v1469_v1  ;;  %v1471_v62 = vcombine.high %v135_v53, %v139_v54  ;;  %v1640_v1 = vld [vmem:[#allocation8 + $0x40] sm:$0xff]  }
  0x6b   :  { %524 = vmatpush1.bf16.msra.mxu0 %v1466_v4  ;;  %567 = vmatpush1.bf16.msra.mxu1 %v1468_v6  ;;  %v1472_v4 = vcombine.low %v136_v57, %v140_v58  ;;  %v1643_v6 = vld [vmem:[#allocation8 + $0x80] sm:$0xff]  }
  0x6c   :  { %595 = vmatprep.subr.bf16.mxu0 %v1415_v8  ;;  %638 = vmatprep.subr.bf16.mxu1 %v1417_v10  ;;  %v1644_v8 = vld [vmem:[#allocation8 + $0x48] sm:$0xff]  }
  0x6d   :  { %v1646_v10 = vld [vmem:[#allocation8 + $0x8] sm:$0xff]  }
  0x6e   :  { %542 = vmatmul.mubr.bf16.vlgmr.msra.gmra.mrb[0].mxu0 %v1927_v7  ;;  %585 = vmatmul.mubr.bf16.vlgmr.msra.gmra.mrb[0].mxu1 %v1927_v7 }
  0x6f   :  { %596 = vmatpush1.bf16.msra.mxu0 %v1414_v13  ;;  %639 = vmatpush1.bf16.msra.mxu1 %v1416_v15  ;;  %v1649_v13 = vld [vmem:[#allocation8 + $0xd0] sm:$0xff]  }
  0x70   :  { %597 = vmatprep.subr.bf16.mxu0 %v1423_v16  ;;  %640 = vmatprep.subr.bf16.mxu1 %v1425_v18  ;;  %v1651_v15 = vld [vmem:[#allocation8 + $0x90] sm:$0xff]   ;;  %v1652_v16 = vld [vmem:[#allocation8 + $0x58] sm:$0xff]  }
  0x71   :  { %627 = vmatprep.mubr.bf16.mxu0 %v1830_v0  ;;  %670 = vmatprep.mubr.bf16.mxu1 %v1830_v0  ;;  %v1447_v0 = vcombine.high %v111_v30, %v115_v33  ;;  %v1654_v18 = vld [vmem:[#allocation8 + $0x18] sm:$0xff]   ;;  %v1667_v30 = vld [vmem:[#allocation8 + $0xb0] sm:$0xff]  }
  0x72   :  { %v1670_v33 = vld [vmem:[#allocation8 + $0x38] sm:$0xff]  }
  0x73   :  { %598 = vmatpush1.bf16.msra.mxu0 %v1422_v21  ;;  %641 = vmatpush1.bf16.msra.mxu1 %v1424_v23  ;;  %v1658_v21 = vld [vmem:[#allocation8 + $0x20] sm:$0xff]   ;;  %v1660_v23 = vld [vmem:[#allocation8 + $0x68] sm:$0xff]  }
  0x74   :  { %599 = vmatprep.subr.bf16.mxu0 %v1431_v24  ;;  %642 = vmatprep.subr.bf16.mxu1 %v1433_v26  ;;  %v1661_v24 = vld [vmem:[#allocation8 + $0xe8] sm:$0xff]  }
  0x75   :  { %v1663_v26 = vld [vmem:[#allocation8 + $0xa8] sm:$0xff]  }
  0x77   :  { %600 = vmatpush1.bf16.msra.mxu0 %v1430_v29  ;;  %643 = vmatpush1.bf16.msra.mxu1 %v1432_v31  ;;  %v1666_v29 = vld [vmem:[#allocation8 + $0x30] sm:$0xff]   ;;  %v1668_v31 = vld [vmem:[#allocation8 + $0x78] sm:$0xff]  }
  0x78   :  { %601 = vmatprep.subr.bf16.mxu0 %v1439_v32  ;;  %644 = vmatprep.subr.bf16.mxu1 %v1441_v34  ;;  %v1669_v32 = vld [vmem:[#allocation8 + $0xf8] sm:$0xff]  }
  0x79   :  { %v1671_v34 = vld [vmem:[#allocation8 + $0xb8] sm:$0xff]  }
  0x7b   :  { %602 = vmatpush1.bf16.msra.mxu0 %v1438_v37  ;;  %645 = vmatpush1.bf16.msra.mxu1 %v1440_v40  ;;  %v143_v37 = vlaneseq  ;;  %v1938_v40 = vld [vmem:[#allocation7] sm:$0xff] }
  0x7c   :  { %603 = vmatprep.subr.bf16.mxu0 %v1447_v0  ;;  %646 = vmatprep.subr.bf16.mxu1 %v1449_v43 }
  0x7d   :  { %v1935_v38 = vshrl.u32 %v143_v37, 7 }
  0x7f   :  { %604 = vmatpush1.bf16.msra.mxu0 %v1446_v44  ;;  %647 = vmatpush1.bf16.msra.mxu1 %v1448_v47  ;;  %v145_v39 = vsub.s32 0, %v1935_v38  ;;  %v153_v0 = vsub.s32 2, %v1935_v38  ;;  %v149_v41 = vsub.s32 1, %v1935_v38  ;;  %v157_v42 = vsub.s32 3, %v1935_v38 }
  0x80   :  { %605 = vmatprep.subr.bf16.mxu0 %v1455_v48  ;;  %648 = vmatprep.subr.bf16.mxu1 %v1457_v51 }
  0x81   :  { %v146_v43 = vrot.slane %v1938_v40, %v145_v39  ;;  %v154_v44 = vrot.slane %v1938_v40, %v153_v0  ;;  %v150_v45 = vrot.slane %v1938_v40, %v149_v41  ;;  %v158_v46 = vrot.slane %v1938_v40, %v157_v42  ;;  %v1695_v39 = vld [vmem:[#allocation8 + $0x1a8] sm:$0xff]   ;;  %v1696_v0 = vld [vmem:[#allocation8 + $0x170] sm:$0xff]  }
  0x83   :  { %606 = vmatpush1.bf16.msra.mxu0 %v1454_v52  ;;  %649 = vmatpush1.bf16.msra.mxu1 %v1456_v55 }
  0x84   :  { %607 = vmatprep.subr.bf16.mxu0 %v1463_v56  ;;  %650 = vmatprep.subr.bf16.mxu1 %v1465_v59 }
  0x87   :  { %608 = vmatpush1.bf16.msra.mxu0 %v1462_v60  ;;  %651 = vmatpush1.bf16.msra.mxu1 %v1464_v61 }
  0x88   :  { %609 = vmatprep.subr.bf16.mxu0 %v1471_v62  ;;  %652 = vmatprep.subr.bf16.mxu1 %v1473_v63 }
  0x8b   :  { %610 = vmatpush1.bf16.msra.mxu0 %v1470_v2  ;;  %653 = vmatpush1.bf16.msra.mxu1 %v1472_v4 }
  0x8c   :  { %1539 = vmatprep.subr.bf16.mxu0 %v1640_v1  ;;  %1561 = vmatprep.subr.bf16.mxu1 %v1641_v3 }
  0x8e   :  { %628 = vmatmul.mubr.bf16.vlgmr.msra.gmra.mrb[4].mxu0 %v1927_v7  ;;  %671 = vmatmul.mubr.bf16.vlgmr.msra.gmra.mrb[4].mxu1 %v1927_v7  ;;  %v1657_v7 = vld [vmem:[#allocation8 + $0xe0] sm:$0xff]  }
  0x8f   :  { %1540 = vmatpush3.bf16.msra.mxu0 %v1642_v5  ;;  %1562 = vmatpush3.bf16.msra.mxu1 %v1643_v6 }
  0x90   :  { %1541 = vmatprep.subr.bf16.mxu0 %v1644_v8  ;;  %1563 = vmatprep.subr.bf16.mxu1 %v1645_v9 }
  0x93   :  { %1542 = vmatpush3.bf16.msra.mxu0 %v1646_v10  ;;  %1564 = vmatpush3.bf16.msra.mxu1 %v1647_v11 }
  0x94   :  { %1543 = vmatprep.subr.bf16.mxu0 %v1648_v12  ;;  %1565 = vmatprep.subr.bf16.mxu1 %v1649_v13  ;;  %v1674_v12 = vld [vmem:[#allocation8 + $0x100] sm:$0xff]  }
  0x97   :  { %1544 = vmatpush3.bf16.msra.mxu0 %v1650_v14  ;;  %1566 = vmatpush3.bf16.msra.mxu1 %v1651_v15  ;;  %v1675_v14 = vld [vmem:[#allocation8 + $0x180] sm:$0xff]   ;;  %v1676_v15 = vld [vmem:[#allocation8 + $0x148] sm:$0xff]  }
  0x98   :  { %1545 = vmatprep.subr.bf16.mxu0 %v1652_v16  ;;  %1567 = vmatprep.subr.bf16.mxu1 %v1653_v17  ;;  %v1677_v16 = vld [vmem:[#allocation8 + $0x1c8] sm:$0xff]  }
  0x99   :  { %v1678_v17 = vld [vmem:[#allocation8 + $0x108] sm:$0xff]  }
  0x9b   :  { %1546 = vmatpush3.bf16.msra.mxu0 %v1654_v18  ;;  %1568 = vmatpush3.bf16.msra.mxu1 %v1655_v19  ;;  %v1679_v18 = vld [vmem:[#allocation8 + $0x188] sm:$0xff]   ;;  %v1680_v19 = vld [vmem:[#allocation8 + $0x150] sm:$0xff]  }
  0x9c   :  { %1547 = vmatprep.subr.bf16.mxu0 %v1656_v20  ;;  %1569 = vmatprep.subr.bf16.mxu1 %v1657_v7  ;;  %v1681_v20 = vld [vmem:[#allocation8 + $0x1d0] sm:$0xff]  }
  0x9d   :  { %v1682_v7 = vld [vmem:[#allocation8 + $0x110] sm:$0xff]  }
  0x9f   :  { %1548 = vmatpush3.bf16.msra.mxu0 %v1658_v21  ;;  %1570 = vmatpush3.bf16.msra.mxu1 %v1659_v22  ;;  %v1683_v21 = vld [vmem:[#allocation8 + $0x190] sm:$0xff]   ;;  %v1684_v22 = vld [vmem:[#allocation8 + $0x158] sm:$0xff]  }
  0xa0   :  { %1549 = vmatprep.subr.bf16.mxu0 %v1660_v23  ;;  %1571 = vmatprep.subr.bf16.mxu1 %v1661_v24  ;;  %v1685_v23 = vld [vmem:[#allocation8 + $0x1d8] sm:$0xff]  }
  0xa1   :  { %v1686_v24 = vld [vmem:[#allocation8 + $0x118] sm:$0xff]  }
  0xa3   :  { %1550 = vmatpush3.bf16.msra.mxu0 %v1662_v25  ;;  %1572 = vmatpush3.bf16.msra.mxu1 %v1663_v26  ;;  %v1687_v25 = vld [vmem:[#allocation8 + $0x198] sm:$0xff]   ;;  %v1688_v26 = vld [vmem:[#allocation8 + $0x160] sm:$0xff]  }
  0xa4   :  { %1551 = vmatprep.subr.bf16.mxu0 %v1664_v27  ;;  %1573 = vmatprep.subr.bf16.mxu1 %v1665_v28  ;;  %v1689_v27 = vld [vmem:[#allocation8 + $0x1e0] sm:$0xff]  }
  0xa5   :  { %v1690_v28 = vld [vmem:[#allocation8 + $0x120] sm:$0xff]  }
  0xa7   :  { %1552 = vmatpush3.bf16.msra.mxu0 %v1666_v29  ;;  %1574 = vmatpush3.bf16.msra.mxu1 %v1667_v30  ;;  %v1691_v29 = vld [vmem:[#allocation8 + $0x1a0] sm:$0xff]   ;;  %v1692_v30 = vld [vmem:[#allocation8 + $0x168] sm:$0xff]  }
  0xa8   :  { %1553 = vmatprep.subr.bf16.mxu0 %v1668_v31  ;;  %1575 = vmatprep.subr.bf16.mxu1 %v1669_v32  ;;  %v161_v31 = vsub.s32 4, %v1935_v38  ;;  %v1693_v32 = vld [vmem:[#allocation8 + $0x1e8] sm:$0xff]  }
  0xaa   :  { %v162_v37 = vrot.slane %v1938_v40, %v161_v31 }
  0xab   :  { %1554 = vmatpush3.bf16.msra.mxu0 %v1670_v33  ;;  %1576 = vmatpush3.bf16.msra.mxu1 %v1671_v34  ;;  %v169_v33 = vsub.s32 6, %v1935_v38  ;;  %v165_v34 = vsub.s32 5, %v1935_v38 }
  0xac   :  { %1583 = vmatprep.subr.bf16.mxu0 %v1672_v35  ;;  %1605 = vmatprep.subr.bf16.mxu1 %v1673_v36  ;;  %v173_v35 = vsub.s32 7, %v1935_v38  ;;  %v1694_v36 = vld [vmem:[#allocation8 + $0x128] sm:$0xff]  }
  0xad   :  { %v170_v41 = vrot.slane %v1938_v40, %v169_v33  ;;  %v166_v42 = vrot.slane %v1938_v40, %v165_v34 }
 0x141   :  { %v543_v47 = vpop.f32.mrb[0].mxu0  ;;  %v586_v49 = vpop.f32.mrb[0].mxu1 }
 0x142   :  { %v544_v48 = vadd.f32 %v543_v47, %v146_v43  ;;  %v545_v50 = vpop.f32.mrb[1].mxu0  ;;  %v587_v51 = vadd.f32 %v586_v49, %v154_v44  ;;  %v588_v53 = vpop.f32.mrb[1].mxu1  ;;  %v1699_v49 = vld [vmem:[#allocation8 + $0x1b0] sm:$0xff]  }
 0x143   :  { %v546_v52 = vadd.f32 %v545_v50, %v150_v45  ;;  %v547_v54 = vpop.f32.mrb[2].mxu0  ;;  %v589_v56 = vadd.f32 %v588_v53, %v158_v46  ;;  %v590_v58 = vpop.f32.mrb[2].mxu1  ;;  %v1700_v50 = vld [vmem:[#allocation8 + $0x178] sm:$0xff]  }
 0x144   :  { %v681_v55 = vmax.f32 %v544_v48, 0.0  ;;  %v548_v57 = vadd.f32 %v547_v54, %v146_v43  ;;  %v549_v59 = vpop.f32.mrb[3].mxu0  ;;  %v683_v60 = vmax.f32 %v587_v51, 0.0  ;;  %v591_v61 = vadd.f32 %v590_v58, %v154_v44  ;;  %v592_v63 = vpop.f32.mrb[3].mxu1  ;;  %v1697_v43 = vld [vmem:[#allocation8 + $0x1f0] sm:$0xff]  }
 0x145   :  { %v550_v62 = vadd.f32 %v549_v59, %v150_v45  ;;  %v684_v1 = vmax.f32 %v589_v56, 0.0  ;;  %v593_v3 = vadd.f32 %v592_v63, %v158_v46  ;;  %v682_v4 = vmax.f32 %v546_v52, 0.0  ;;  %v1698_v46 = vld [vmem:[#allocation8 + $0x130] sm:$0xff]   ;;  %v1702_v63 = vld [vmem:[#allocation8 + $0x138] sm:$0xff]  }
 0x146   :  { %v689_v2 = vmax.f32 %v548_v57, 0.0  ;;  %v691_v5 = vmax.f32 %v591_v61, 0.0  ;;  %v174_v44 = vrot.slane %v1938_v40, %v173_v35 }
 0x147   :  { %v690_v6 = vmax.f32 %v550_v62, 0.0  ;;  %v692_v9 = vmax.f32 %v593_v3, 0.0 }
 0x148   :  { %v697_v8 = vpack.c.bf16 %v689_v2, %v681_v55  ;;  %v699_v10 = vpack.c.bf16 %v691_v5, %v683_v60  ;;  %v1701_v55 = vld [vmem:[#allocation8 + $0x1f8] sm:$0xff]  }
 0x149   :  { %v698_v11 = vpack.c.bf16 %v690_v6, %v682_v4  ;;  %v700_v13 = vpack.c.bf16 %v692_v9, %v684_v1  ;;  %v1703_v5 = vld [vmem:[#allocation8 + $0x1b8] sm:$0xff]  }
 0x14b   :  { %1256 = vmatprep.mubr.bf16.mxu0 %v698_v11  ;;  %1297 = vmatprep.mubr.bf16.mxu1 %v700_v13 }
 0x14c   :  { %1257 = vmatmul.mubr.bf16.vlgmr.msra.gmra.mrb[8].mxu0 %v697_v8  ;;  %1298 = vmatmul.mubr.bf16.vlgmr.msra.gmra.mrb[8].mxu1 %v699_v10 }
 0x14d   :  { %1584 = vmatpush3.bf16.msra.mxu0 %v1674_v12  ;;  %1606 = vmatpush3.bf16.msra.mxu1 %v1675_v14 }
 0x14e   :  { %1585 = vmatprep.subr.bf16.mxu0 %v1676_v15  ;;  %1607 = vmatprep.subr.bf16.mxu1 %v1677_v16 }
 0x151   :  { %1586 = vmatpush3.bf16.msra.mxu0 %v1678_v17  ;;  %1608 = vmatpush3.bf16.msra.mxu1 %v1679_v18  ;;  %v1474_v17 = vld [vmem:[%s1974_s4] ss:$0 sm:$0xff]  ;;  %s1831_s4 = smov [#allocation10]  }
 0x152   :  { %1587 = vmatprep.subr.bf16.mxu0 %v1680_v19  ;;  %1609 = vmatprep.subr.bf16.mxu1 %v1681_v20  ;;  %s1395_s17 = sshll.u32 %s1831_s4, 4  ;;  %s1396_s17 = int_to_ptr.vmem [resolvable:$true] %s1395_s17 }
 0x153   :  { %s1792_s18 = scalar_lea.vmem %s1396_s17, 256  ;;  %p1797_p5 = scmp.lt.s32.totalorder %s1396_s17, %s1396_s17 }
 0x154   :  { %p1793_p4 = scmp.ne.s32.totalorder %s1396_s17, %s1792_s18  ;;  %p1798_p6 = scmp.lt.s32.totalorder %s1792_s18, %s1792_s18 }
 0x155   :  { %1588 = vmatpush3.bf16.msra.mxu0 %v1682_v7  ;;  %1610 = vmatpush3.bf16.msra.mxu1 %v1683_v21 }
 0x156   :  { %1589 = vmatprep.subr.bf16.mxu0 %v1684_v22  ;;  %1611 = vmatprep.subr.bf16.mxu1 %v1685_v23  ;;  %p1799_p7 = por %p1798_p6, %p1797_p5 }
 0x158   :  { %p1800_p8 = pnand %p1799_p7, %p1793_p4 }
 0x159   :  { %1590 = vmatpush3.bf16.msra.mxu0 %v1686_v24  ;;  %1612 = vmatpush3.bf16.msra.mxu1 %v1687_v25 }
 0x15a   :  { %1591 = vmatprep.subr.bf16.mxu0 %v1688_v26  ;;  %1613 = vmatprep.subr.bf16.mxu1 %v1689_v27 }
 0x15d   :  { %1592 = vmatpush3.bf16.msra.mxu0 %v1690_v28  ;;  %1614 = vmatpush3.bf16.msra.mxu1 %v1691_v29 }
 0x15e   :  { %1593 = vmatprep.subr.bf16.mxu0 %v1692_v30  ;;  %1615 = vmatprep.subr.bf16.mxu1 %v1693_v32 }
 0x161   :  { %v629_v45 = vpop.f32.mrb[4].mxu0  ;;  %1594 = vmatpush3.bf16.msra.mxu0 %v1694_v36  ;;  %v672_v47 = vpop.f32.mrb[4].mxu1  ;;  %1616 = vmatpush3.bf16.msra.mxu1 %v1695_v39 }
 0x162   :  { %v630_v38 = vadd.f32 %v629_v45, %v162_v37  ;;  %v631_v48 = vpop.f32.mrb[5].mxu0  ;;  %1595 = vmatprep.subr.bf16.mxu0 %v1696_v0  ;;  %v673_v51 = vadd.f32 %v672_v47, %v170_v41  ;;  %v674_v53 = vpop.f32.mrb[5].mxu1  ;;  %1617 = vmatprep.subr.bf16.mxu1 %v1697_v43 }
 0x163   :  { %v632_v52 = vadd.f32 %v631_v48, %v166_v42  ;;  %v633_v54 = vpop.f32.mrb[6].mxu0  ;;  %v675_v56 = vadd.f32 %v674_v53, %v174_v44  ;;  %v676_v58 = vpop.f32.mrb[6].mxu1 }
 0x164   :  { %v634_v57 = vadd.f32 %v633_v54, %v162_v37  ;;  %v635_v40 = vpop.f32.mrb[7].mxu0  ;;  %v687_v59 = vmax.f32 %v673_v51, 0.0  ;;  %v677_v60 = vadd.f32 %v676_v58, %v170_v41  ;;  %v678_v62 = vpop.f32.mrb[7].mxu1  ;;  %v685_v1 = vmax.f32 %v630_v38, 0.0 }
 0x165   :  { %v636_v61 = vadd.f32 %v635_v40, %v166_v42  ;;  %1596 = vmatpush3.bf16.msra.mxu0 %v1698_v46  ;;  %v688_v2 = vmax.f32 %v675_v56, 0.0  ;;  %v679_v4 = vadd.f32 %v678_v62, %v174_v44  ;;  %1618 = vmatpush3.bf16.msra.mxu1 %v1699_v49  ;;  %v686_v6 = vmax.f32 %v632_v52, 0.0 }
 0x166   :  { %v693_v3 = vmax.f32 %v634_v57, 0.0  ;;  %1597 = vmatprep.subr.bf16.mxu0 %v1700_v50  ;;  %v695_v8 = vmax.f32 %v677_v60, 0.0  ;;  %1619 = vmatprep.subr.bf16.mxu1 %v1701_v55 }
 0x167   :  { %v694_v9 = vmax.f32 %v636_v61, 0.0  ;;  %v696_v11 = vmax.f32 %v679_v4, 0.0 }
 0x168   :  { %v701_v10 = vpack.c.bf16 %v693_v3, %v685_v1  ;;  %v703_v12 = vpack.c.bf16 %v695_v8, %v687_v59 }
 0x169   :  { %v702_v13 = vpack.c.bf16 %v694_v9, %v686_v6  ;;  %1598 = vmatpush3.bf16.msra.mxu0 %v1702_v63  ;;  %v704_v14 = vpack.c.bf16 %v696_v11, %v688_v2  ;;  %1620 = vmatpush3.bf16.msra.mxu1 %v1703_v5 }
 0x16b   :  { %1338 = vmatprep.mubr.bf16.mxu0 %v702_v13  ;;  %1379 = vmatprep.mubr.bf16.mxu1 %v704_v14 }
 0x16c   :  { %1339 = vmatmul.mubr.bf16.vlgmr.msra.gmra.mrb[12].mxu0 %v701_v10  ;;  %1380 = vmatmul.mubr.bf16.vlgmr.msra.gmra.mrb[12].mxu1 %v703_v12 }
 0x21f   :  { %v1555_v15 = vpop.f32.mrb[8].mxu0  ;;  %v1577_v16 = vpop.f32.mrb[8].mxu1 }
 0x220   :  { %v1556_v18 = vpop.f32.mrb[9].mxu0  ;;  %v1578_v20 = vpop.f32.mrb[9].mxu1 }
 0x221   :  { %v1557_v19 = vadd.f32 %v1556_v18, %v1555_v15  ;;  %v1558_v7 = vpop.f32.mrb[10].mxu0  ;;  %v1579_v21 = vadd.f32 %v1578_v20, %v1577_v16  ;;  %v1580_v22 = vpop.f32.mrb[10].mxu1 }
 0x222   :  { %v1559_v23 = vpop.f32.mrb[11].mxu0  ;;  %v1581_v26 = vpop.f32.mrb[11].mxu1 }
 0x223   :  { %v1259_v24 = vadd.f32 %v1557_v19, %v1474_v17  ;;  %v1560_v25 = vadd.f32 %v1559_v23, %v1558_v7  ;;  %v1582_v27 = vadd.f32 %v1581_v26, %v1580_v22 }
 0x225   :  { %v1300_v28 = vadd.f32 %v1579_v21, %v1259_v24  ;;  %v1262_v29 = vadd.f32 %v1560_v25, %v1474_v17 }
 0x227   :  { %v1303_v30 = vadd.f32 %v1582_v27, %v1262_v29 }
 0x23f   :  { %v1599_v31 = vpop.f32.mrb[12].mxu0  ;;  %v1621_v32 = vpop.f32.mrb[12].mxu1 }
 0x240   :  { %v1600_v33 = vpop.f32.mrb[13].mxu0  ;;  %v1622_v35 = vpop.f32.mrb[13].mxu1 }
 0x241   :  { %v1601_v34 = vadd.f32 %v1600_v33, %v1599_v31  ;;  %v1602_v36 = vpop.f32.mrb[14].mxu0  ;;  %v1623_v37 = vadd.f32 %v1622_v35, %v1621_v32  ;;  %v1624_v39 = vpop.f32.mrb[14].mxu1 }
 0x242   :  { %v1603_v0 = vpop.f32.mrb[15].mxu0  ;;  %v1625_v43 = vpop.f32.mrb[15].mxu1 }
 0x243   :  { %v1341_v41 = vadd.f32 %v1601_v34, %v1300_v28  ;;  %v1604_v42 = vadd.f32 %v1603_v0, %v1602_v36  ;;  %v1626_v44 = vadd.f32 %v1625_v43, %v1624_v39 }
 0x245   :  { %v1382_v45 = vadd.f32 %v1623_v37, %v1341_v41  ;;  %v1344_v46 = vadd.f32 %v1604_v42, %v1303_v30 }
 0x247   :  { %1388 = vst [vmem:[#allocation10] sm:$0xff] %v1382_v45  ;;  %v1385_v38 = vadd.f32 %v1626_v44, %v1344_v46 }
 0x249   :  { %1389 = vst [vmem:[#allocation10 + $0x8] sm:$0xff] %v1385_v38 }
 0x24a   :  { %1803 = shalt.err (!%p1800_p8)
}
 0x24b   :  { %s1804_s21 = scalar_lea.hbm %s1975_s5, 256 }
 0x24c   :  { %p1805_p9 = scmp.ne.s32.totalorder %s1975_s5, %s1804_s21  ;;  %p1808_p10 = scmp.lt.u32.totalorder %s1804_s21, %s1975_s5 }
 0x24e   :  { %p1810_p11 = pnand %p1808_p10, %p1805_p9 }
 0x250   :  { %1813 = shalt.err (!%p1810_p11)
}
 0x251   :  { %s1832_s26 = smov 128   ;;  %s1833_s27 = smov 8  }
 0x252   :  { %1401 = dma.vmem_to_hbm [thread:$0]  %s1396_s17, 256, %s1975_s5, [#allocation4], %s1832_s26, %s1832_s26, %s1833_s27  }
 0x253   :  { %1820 = dma.done.wait [#allocation4], 256  }
 0x254   :  { %1821 = vsyncadd [#allocation4], 4294967040 }
 0x255   :  { %1405 = vsyncpa [#allocation3], 1 }
 0x256   :  { %1406 = vsyncpa [#allocation6], 1 }
 0x257   :  { %1407 = vsyncpa [#allocation9], 1 }
 0x258   :  { %1408 = vsyncpa [#allocation4], 1 }

</bundles_post_ra>
